<compile_context>
chip_gen: v5e
topology: v5e:2x2
jax: 0.10.0
libtpu: 0.0.40
codegen_flags: <defaults>
</compile_context>

<pallas_src>
import jax
import jax.numpy as jnp
from jax.experimental import pallas as pl
from jax.experimental.pallas import tpu as pltpu

HIDDEN = 128
HEADS = 4
HEAD_SIZE = HIDDEN // HEADS          # 32
INTERMEDIATE = 4 * HIDDEN            # 512
ROTARY_PCT = 0.25
ROTARY_NDIMS = int(HEAD_SIZE * ROTARY_PCT)   # 8
ROTARY_BASE = 10000.0
LN_EPS = 1e-5

VMEM_LIMIT_BYTES = 56 * 1024 * 1024  # > 16/32 MiB defaults, < v7x 64 MiB physical

assert HIDDEN % HEADS == 0
assert ROTARY_NDIMS % 2 == 0 and ROTARY_NDIMS <= HEAD_SIZE
# NOTE: the slab-wise pltpu.roll rope below wraps across head boundaries; this
# is neutralized because sin_fwd/sin_bwd are exactly zero on every lane whose
# rotated partner would come from another head (requires rotary_ndims <= head_size).


# ----------------------------------------------------------- tile helpers ---

def _seq_tile(s, cap=256):
    t = min(s, cap)
    while s % t:
        t -= 8
    return max(t, 8)


def _row_tile(m, cap=256):
    # Prefer >=2 parallel row programs (v7x has 2 TensorCores) while keeping
    # tiles as large as possible (bigger tiles amortize ~0.35us/step overhead).
    # TODO(synk): on v6e (128 MiB VMEM) cap=512 reaches ~85% of HBM roofline.
    t = min(m, cap)
    if m // t < 2 and m > 8:
        t = 8 * max(1, (m // 2) // 8)
    while m % t:
        t -= 8
    return max(t, 8)


# --------------------------------------------------------------- kernel 1 ---
# LN1 + fused QKV projection + rotary.  Emits Q (pre-scaled), K, V in bf16.

def _qkv_rope_kernel(x_ref, g_ref, b_ref, wqkv_ref, bqkv_ref,
                     cos_ref, sinf_ref, sinb_ref, q_ref, k_ref, v_ref):
    x = x_ref[0].astype(jnp.float32)                          # [tq, H]
    mean = jnp.mean(x, axis=-1, keepdims=True)
    var = jnp.mean(jnp.square(x - mean), axis=-1, keepdims=True)
    ln = (x - mean) * jax.lax.rsqrt(var + LN_EPS) * g_ref[...] + b_ref[...]

    # Fused QKV projection; columns were pre-permuted so the output is
    # [Q(all heads) | K(all heads) | V(all heads)], each 128-lane aligned.
    qkv = jnp.dot(ln.astype(jnp.bfloat16), wqkv_ref[...],
                  preferred_element_type=jnp.float32) + bqkv_ref[...]
    q = qkv[:, 0 * HIDDEN:1 * HIDDEN]
    k = qkv[:, 1 * HIDDEN:2 * HIDDEN]
    v = qkv[:, 2 * HIDDEN:3 * HIDDEN]

    # Rotary: t*cos + roll(t,+half)*sin_fwd + roll(t,-half)*sin_bwd.
    # sin_fwd/sin_bwd carry the rotate_half sign/selection, so this is pure
    # VPU mul-add + XLU roll (no iota, no where, no per-head slicing).
    half = ROTARY_NDIMS // 2
    cos = cos_ref[...]
    sf = sinf_ref[...]
    sb = sinb_ref[...]

    def rope(t):
        return (t * cos
                + pltpu.roll(t, half, axis=1) * sf
                + pltpu.roll(t, HIDDEN - half, axis=1) * sb)

    scale = 1.0 / jnp.sqrt(jnp.float32(HEAD_SIZE))
    q_ref[0] = (rope(q) * scale).astype(q_ref.dtype)          # lane-dense stores
    k_ref[0] = rope(k).astype(k_ref.dtype)
    v_ref[0] = v.astype(v_ref.dtype)


def qkv_rope(x, params):
    B, S, H = x.shape
    tq = _seq_tile(S)
    out_sds = jax.ShapeDtypeStruct((B, S, H), jnp.bfloat16)
    # TODO(synk): at real hidden=6144 the (H, 3H) bf16 weight block is ~226 MB;
    # the 3H output axis needs an additional column-tile grid dimension.
    return pl.pallas_call(
        _qkv_rope_kernel,
        out_shape=(out_sds, out_sds, out_sds),
        grid=(B, S // tq),
        in_specs=[
            pl.BlockSpec((1, tq, H), lambda b, q: (b, q, 0)),      # x rows
            pl.BlockSpec((1, H), lambda b, q: (0, 0)),             # ln1 gamma
            pl.BlockSpec((1, H), lambda b, q: (0, 0)),             # ln1 beta
            pl.BlockSpec((H, 3 * H), lambda b, q: (0, 0)),         # qkv W (bf16)
            pl.BlockSpec((1, 3 * H), lambda b, q: (0, 0)),         # qkv b
            pl.BlockSpec((tq, H), lambda b, q: (q, 0)),            # rope cos
            pl.BlockSpec((tq, H), lambda b, q: (q, 0)),            # rope sin_fwd
            pl.BlockSpec((tq, H), lambda b, q: (q, 0)),            # rope sin_bwd
        ],
        out_specs=(pl.BlockSpec((1, tq, H), lambda b, q: (b, q, 0)),
                   pl.BlockSpec((1, tq, H), lambda b, q: (b, q, 0)),
                   pl.BlockSpec((1, tq, H), lambda b, q: (b, q, 0))),
        compiler_params=pltpu.CompilerParams(
            dimension_semantics=("parallel", "parallel"),
            vmem_limit_bytes=VMEM_LIMIT_BYTES),
    )(x, params["ln1_g"], params["ln1_b"], params["qkv_w"], params["qkv_b"],
      params["rope_cos"], params["rope_sin_fwd"], params["rope_sin_bwd"])


# --------------------------------------------------------------- kernel 2 ---
# Flash-style causal attention, heads batched in a single einsum.

def _flash_attn_kernel(q_ref, k_ref, v_ref, o_ref, q_sc, m_sc, l_sc, acc_sc):
    qi = pl.program_id(1)
    ki = pl.program_id(2)
    tq = q_ref.shape[1]
    tk = k_ref.shape[1]

    @pl.when(ki == 0)
    def _():
        # Cache head-major Q once per q-tile; init online-softmax state.
        q_sc[...] = q_ref[0].reshape(tq, HEADS, HEAD_SIZE).transpose(1, 0, 2)
        m_sc[...] = jnp.full(m_sc.shape, -jnp.inf, m_sc.dtype)
        l_sc[...] = jnp.zeros_like(l_sc)
        acc_sc[...] = jnp.zeros_like(acc_sc)

    # Skip kv blocks that lie entirely above the causal diagonal.
    @pl.when(ki * tk <= qi * tq + (tq - 1))
    def _():
        k = k_ref[0].reshape(tk, HEADS, HEAD_SIZE).transpose(1, 0, 2)  # [h,tk,d]
        v = v_ref[0].reshape(tk, HEADS, HEAD_SIZE).transpose(1, 0, 2)
        q = q_sc[...]                                                  # [h,tq,d]
        s = jnp.einsum("hqd,hkd->hqk", q, k,
                       preferred_element_type=jnp.float32)            # q pre-scaled
        qpos = qi * tq + jax.lax.broadcasted_iota(jnp.int32, (1, tq, tk), 1)
        kpos = ki * tk + jax.lax.broadcasted_iota(jnp.int32, (1, tq, tk), 2)
        s = jnp.where(kpos <= qpos, s, -1e30)                          # finite mask

        m_prev = m_sc[...]
        m_new = jnp.maximum(m_prev, jnp.max(s, axis=-1, keepdims=True))
        alpha = jnp.exp(m_prev - m_new)
        p = jnp.exp(s - m_new)
        l_sc[...] = alpha * l_sc[...] + jnp.sum(p, axis=-1, keepdims=True)
        acc_sc[...] = alpha * acc_sc[...] + jnp.einsum(
            "hqk,hkd->hqd", p.astype(v.dtype), v,
            preferred_element_type=jnp.float32)
        m_sc[...] = m_new

    @pl.when(ki == pl.num_programs(2) - 1)
    def _():
        # Softmax normalization on the EUP (reciprocal slot is ~free).
        ctx = acc_sc[...] * pl.reciprocal(l_sc[...], approx=True)
        o_ref[0] = ctx.transpose(1, 0, 2).reshape(tq, HIDDEN).astype(o_ref.dtype)


def flash_attention(q, k, v):
    B, S, H = q.shape
    tq = _seq_tile(S)
    tk = _seq_tile(S)
    return pl.pallas_call(
        _flash_attn_kernel,
        out_shape=jax.ShapeDtypeStruct((B, S, H), jnp.bfloat16),
        grid=(B, S // tq, S // tk),
        in_specs=[
            pl.BlockSpec((1, tq, H), lambda b, qi, ki: (b, qi, 0)),
            pl.BlockSpec((1, tk, H), lambda b, qi, ki: (b, ki, 0)),
            pl.BlockSpec((1, tk, H), lambda b, qi, ki: (b, ki, 0)),
        ],
        out_specs=pl.BlockSpec((1, tq, H), lambda b, qi, ki: (b, qi, 0)),
        scratch_shapes=[
            pltpu.VMEM((HEADS, tq, HEAD_SIZE), jnp.bfloat16),   # head-major Q
            pltpu.VMEM((HEADS, tq, 1), jnp.float32),            # running max
            pltpu.VMEM((HEADS, tq, 1), jnp.float32),            # running denom
            pltpu.VMEM((HEADS, tq, HEAD_SIZE), jnp.float32),    # context acc
        ],
        compiler_params=pltpu.CompilerParams(
            dimension_semantics=("parallel", "parallel", "arbitrary"),
            vmem_limit_bytes=VMEM_LIMIT_BYTES),
    )(q, k, v)


# --------------------------------------------------------------- kernel 3 ---
# Attention output projection + LN2 + MLP + parallel residual:
#   out = fc2(gelu_fast(fc1(LN2(x)))) + (ctx @ Wo + bo) + x

def _mlp_residual_kernel(x_ref, ctx_ref, g_ref, b_ref, wo_ref, bo_ref,
                         w1_ref, b1_ref, w2_ref, b2_ref, o_ref,
                         attn_sc, ln_sc, acc_sc):
    it = pl.program_id(1)

    @pl.when(it == 0)
    def _():
        x = x_ref[...].astype(jnp.float32)
        mean = jnp.mean(x, axis=-1, keepdims=True)
        var = jnp.mean(jnp.square(x - mean), axis=-1, keepdims=True)
        ln = (x - mean) * jax.lax.rsqrt(var + LN_EPS) * g_ref[...] + b_ref[...]
        ln_sc[...] = ln.astype(ln_sc.dtype)
        # attention.dense projection fused here (ctx handoff is bf16)
        attn_sc[...] = (jnp.dot(ctx_ref[...], wo_ref[...],
                                preferred_element_type=jnp.float32) + bo_ref[...])
        acc_sc[...] = jnp.zeros_like(acc_sc)

    h = jnp.dot(ln_sc[...], w1_ref[...], preferred_element_type=jnp.float32)
    h = h + b1_ref[...]
    # transformers gelu_fast
    h = 0.5 * h * (1.0 + jnp.tanh(h * 0.7978845608 * (1.0 + 0.044715 * h * h)))
    acc_sc[...] += jnp.dot(h.astype(jnp.bfloat16), w2_ref[...],
                           preferred_element_type=jnp.float32)

    @pl.when(it == pl.num_programs(1) - 1)
    def _():
        out = (acc_sc[...] + b2_ref[...]
               + attn_sc[...] + x_ref[...].astype(jnp.float32))   # parallel residual
        o_ref[...] = out.astype(o_ref.dtype)


def mlp_dense_residual(x2d, ctx2d, params):
    M, H = x2d.shape
    inter = params["fc1_w"].shape[1]
    tm = _row_tile(M)            # >=2 parallel programs for v7x's 2 TCs
    ti = min(inter, 256)         # 256-aligned for v6e/v7x MXU; 128-ok on v5e
    assert M % tm == 0 and inter % ti == 0
    # TODO(synk): at real hidden=6144 on v7x, also tile the hidden contraction
    # axis of fc1 (third 'arbitrary' grid axis) if VMEM is still tight after bf16.
    return pl.pallas_call(
        _mlp_residual_kernel,
        out_shape=jax.ShapeDtypeStruct((M, H), x2d.dtype),
        grid=(M // tm, inter // ti),
        in_specs=[
            pl.BlockSpec((tm, H), lambda m, i: (m, 0)),     # x rows (f32)
            pl.BlockSpec((tm, H), lambda m, i: (m, 0)),     # attention ctx (bf16)
            pl.BlockSpec((1, H), lambda m, i: (0, 0)),      # ln2 gamma
            pl.BlockSpec((1, H), lambda m, i: (0, 0)),      # ln2 beta
            pl.BlockSpec((H, H), lambda m, i: (0, 0)),      # dense W (bf16)
            pl.BlockSpec((1, H), lambda m, i: (0, 0)),      # dense b
            pl.BlockSpec((H, ti), lambda m, i: (0, i)),     # fc1 W (bf16)
            pl.BlockSpec((1, ti), lambda m, i: (0, i)),     # fc1 b
            pl.BlockSpec((ti, H), lambda m, i: (i, 0)),     # fc2 W (bf16)
            pl.BlockSpec((1, H), lambda m, i: (0, 0)),      # fc2 b
        ],
        out_specs=pl.BlockSpec((tm, H), lambda m, i: (m, 0)),
        scratch_shapes=[pltpu.VMEM((tm, H), jnp.float32),     # attn projection
                        pltpu.VMEM((tm, H), jnp.bfloat16),    # LN2(x) cache
                        pltpu.VMEM((tm, H), jnp.float32)],    # f32 accumulator
        compiler_params=pltpu.CompilerParams(
            dimension_semantics=("parallel", "arbitrary"),
            vmem_limit_bytes=VMEM_LIMIT_BYTES),
    )(x2d, ctx2d, params["ln2_g"], params["ln2_b"],
      params["dense_w"], params["dense_b"],
      params["fc1_w"], params["fc1_b"], params["fc2_w"], params["fc2_b"])


# ------------------------------------------------------------------- prep ---

def _rotary_tables(max_seq):
    """[max_seq, HIDDEN] cos / sin_fwd / sin_bwd slabs.

    sin_fwd carries sin on each head's lanes [half, rot), sin_bwd carries -sin
    on lanes [0, half); both are zero everywhere else (incl. non-rotary dims),
    so rope(t) = t*cos + roll(t,+half)*sin_fwd + roll(t,-half)*sin_bwd
    reproduces GPT-NeoX rotate_half exactly with no per-head masking.
    """
    half = ROTARY_NDIMS // 2
    inv_freq = 1.0 / (ROTARY_BASE ** (
        jnp.arange(0, ROTARY_NDIMS, 2, dtype=jnp.float32) / ROTARY_NDIMS))
    t = jnp.arange(max_seq, dtype=jnp.float32)
    freqs = jnp.einsum("i,j->ij", t, inv_freq)                  # [S, rot/2]
    emb = jnp.concatenate([freqs, freqs], axis=-1)              # [S, rot]
    pad = HEAD_SIZE - ROTARY_NDIMS
    zeros_pad = jnp.zeros((max_seq, pad), jnp.float32)
    cos_h = jnp.concatenate(
        [jnp.cos(emb), jnp.ones((max_seq, pad), jnp.float32)], axis=-1)
    sin_e = jnp.sin(emb)
    sin_fwd_h = jnp.concatenate(
        [jnp.zeros((max_seq, half), jnp.float32), sin_e[:, half:], zeros_pad], axis=-1)
    sin_bwd_h = jnp.concatenate(
        [-sin_e[:, :half], jnp.zeros((max_seq, HEAD_SIZE - half), jnp.float32)], axis=-1)
    rep = lambda a: jnp.tile(a, (1, HEADS))
    return rep(cos_h), rep(sin_fwd_h), rep(sin_bwd_h)


def _qkv_permutation():
    # New column order: [q(all heads) | k(all heads) | v(all heads)], heads
    # contiguous on the lane axis.  Original GPT-NeoX qkv rows interleave per
    # head: row = h*3*Dh + t*Dh + d  (t in {q,k,v}).
    t = jnp.arange(3)[:, None, None]
    h = jnp.arange(HEADS)[None, :, None]
    d = jnp.arange(HEAD_SIZE)[None, None, :]
    return (h * 3 * HEAD_SIZE + t * HEAD_SIZE + d).reshape(-1)


def init_params(key):
    """Logical weights in torch nn.Linear convention ([out, in]), f32."""
    ks = jax.random.split(key, 4)
    std = 0.02
    return {
        "ln1_g": jnp.ones((HIDDEN,), jnp.float32),
        "ln1_b": jnp.zeros((HIDDEN,), jnp.float32),
        "ln2_g": jnp.ones((HIDDEN,), jnp.float32),
        "ln2_b": jnp.zeros((HIDDEN,), jnp.float32),
        "qkv_w": std * jax.random.normal(ks[0], (3 * HIDDEN, HIDDEN), jnp.float32),
        "qkv_b": jnp.zeros((3 * HIDDEN,), jnp.float32),
        "dense_w": std * jax.random.normal(ks[1], (HIDDEN, HIDDEN), jnp.float32),
        "dense_b": jnp.zeros((HIDDEN,), jnp.float32),
        "fc1_w": std * jax.random.normal(ks[2], (INTERMEDIATE, HIDDEN), jnp.float32),
        "fc1_b": jnp.zeros((INTERMEDIATE,), jnp.float32),
        "fc2_w": std * jax.random.normal(ks[3], (HIDDEN, INTERMEDIATE), jnp.float32),
        "fc2_b": jnp.zeros((HIDDEN,), jnp.float32),
    }


def prepare_params(raw, max_seq):
    """One-time layout prep: transpose to [in,out], permute QKV columns,
    cast weights to bf16 (biases/LN stay f32), precompute rotary tables."""
    perm = _qkv_permutation()
    cos, sin_fwd, sin_bwd = _rotary_tables(max_seq)
    bf = jnp.bfloat16
    return {
        "ln1_g": raw["ln1_g"].reshape(1, -1),
        "ln1_b": raw["ln1_b"].reshape(1, -1),
        "ln2_g": raw["ln2_g"].reshape(1, -1),
        "ln2_b": raw["ln2_b"].reshape(1, -1),
        "qkv_w": jnp.take(raw["qkv_w"], perm, axis=0).T.astype(bf),  # [H,3H]=[Q|K|V]
        "qkv_b": jnp.take(raw["qkv_b"], perm, axis=0).reshape(1, -1),
        "dense_w": raw["dense_w"].T.astype(bf),                      # [H, H]
        "dense_b": raw["dense_b"].reshape(1, -1),
        "fc1_w": raw["fc1_w"].T.astype(bf),                          # [H, I]
        "fc1_b": raw["fc1_b"].reshape(1, -1),
        "fc2_w": raw["fc2_w"].T.astype(bf),                          # [I, H]
        "fc2_b": raw["fc2_b"].reshape(1, -1),
        "rope_cos": cos, "rope_sin_fwd": sin_fwd, "rope_sin_bwd": sin_bwd,
    }


# ---------------------------------------------------------------- forward ---

def gpt_neox_layer_forward(params, hidden_states):
    """GPTNeoXLayer forward (parallel residual, eval mode, no masks / KV cache).
    TODO(synk): attention_mask / head_mask / layer_past / use_cache /
    output_attentions paths of the original forward are not implemented
    (the spec calls it with defaults)."""
    B, S, H = hidden_states.shape
    assert H == HIDDEN and S % 8 == 0 and (B * S) % 8 == 0
    q, k, v = qkv_rope(hidden_states, params)
    ctx = flash_attention(q, k, v)
    out2d = mlp_dense_residual(hidden_states.reshape(B * S, H),
                               ctx.reshape(B * S, H), params)
    return out2d.reshape(B, S, H)


if __name__ == "__main__":
    key = jax.random.PRNGKey(0)
    k_params, k_input = jax.random.split(key)

    B, S = 2, 8
    hidden_states = jax.random.normal(k_input, (B, S, HIDDEN), jnp.float32)
    params = prepare_params(init_params(k_params), max_seq=S)

    out = jax.jit(gpt_neox_layer_forward)(params, hidden_states)
    out = jax.block_until_ready(out)

    assert out.shape == (B, S, HIDDEN)
    assert bool(jnp.all(jnp.isfinite(out)))
    print("KERNEL_OK")
</pallas_src>

<mosaic_0001>
module attributes {stable_mosaic.version = 11 : i64} {
  func.func @_mlp_residual_kernel(%arg0: i32, %arg1: i32, %arg2: memref<8x128xf32, #tpu.memory_space<vmem>>, %arg3: memref<8x128xbf16, #tpu.memory_space<vmem>>, %arg4: memref<1x128xf32, #tpu.memory_space<vmem>>, %arg5: memref<1x128xf32, #tpu.memory_space<vmem>>, %arg6: memref<128x128xbf16, #tpu.memory_space<vmem>>, %arg7: memref<1x128xf32, #tpu.memory_space<vmem>>, %arg8: memref<128x256xbf16, #tpu.memory_space<vmem>>, %arg9: memref<1x256xf32, #tpu.memory_space<vmem>>, %arg10: memref<256x128xbf16, #tpu.memory_space<vmem>>, %arg11: memref<1x128xf32, #tpu.memory_space<vmem>>, %arg12: memref<8x128xf32, #tpu.memory_space<vmem>>, %arg13: memref<8x128xf32, #tpu.memory_space<vmem>>, %arg14: memref<8x128xbf16, #tpu.memory_space<vmem>>, %arg15: memref<8x128xf32, #tpu.memory_space<vmem>>) attributes {dimension_semantics = [#tpu.dimension_semantics<parallel>, #tpu.dimension_semantics<arbitrary>], iteration_bounds = array<i64: 2, 2>, scalar_prefetch = 0 : i64, scratch_operands = 3 : i64, tpu.core_type = #tpu.core_type<tc>, window_params = [{transform_indices = @transform_0, window_bounds = array<i64: 8, 128>}, {transform_indices = @transform_1, window_bounds = array<i64: 8, 128>}, {pipeline_mode = #tpu.pipeline_mode<synchronous>, transform_indices = @transform_2, window_bounds = array<i64: 1, 128>}, {pipeline_mode = #tpu.pipeline_mode<synchronous>, transform_indices = @transform_3, window_bounds = array<i64: 1, 128>}, {pipeline_mode = #tpu.pipeline_mode<synchronous>, transform_indices = @transform_4, window_bounds = array<i64: 128, 128>}, {pipeline_mode = #tpu.pipeline_mode<synchronous>, transform_indices = @transform_5, window_bounds = array<i64: 1, 128>}, {transform_indices = @transform_6, window_bounds = array<i64: 128, 256>}, {transform_indices = @transform_7, window_bounds = array<i64: 1, 256>}, {transform_indices = @transform_8, window_bounds = array<i64: 256, 128>}, {pipeline_mode = #tpu.pipeline_mode<synchronous>, transform_indices = @transform_9, window_bounds = array<i64: 1, 128>}, {transform_indices = @transform_10, window_bounds = array<i64: 8, 128>}]} {
    %c0_i32 = arith.constant 0 : i32
    %0 = arith.cmpi eq, %arg1, %c0_i32 : i32
    %1 = arith.extui %0 : i1 to i32
    %c0_i32_0 = arith.constant 0 : i32
    %2 = arith.cmpi ne, %1, %c0_i32_0 : i32
    scf.if %2 {
      %c0_19 = arith.constant 0 : index
      %c0_20 = arith.constant 0 : index
      %32 = vector.load %arg2[%c0_19, %c0_20] : memref<8x128xf32, #tpu.memory_space<vmem>>, vector<8x128xf32>
      %cst_21 = arith.constant dense<0.000000e+00> : vector<8xf32>
      %33 = vector.multi_reduction <add>, %32, %cst_21 [1] : vector<8x128xf32> to vector<8xf32>
      %34 = vector.shape_cast %33 : vector<8xf32> to vector<8x1xf32>
      %cst_22 = arith.constant 1.280000e+02 : f32
      %35 = vector.broadcast %cst_22 : f32 to vector<8x1xf32>
      %36 = arith.divf %34, %35 : vector<8x1xf32>
      %37 = vector.broadcast %36 : vector<8x1xf32> to vector<8x128xf32>
      %38 = arith.subf %32, %37 : vector<8x128xf32>
      %39 = arith.mulf %38, %38 : vector<8x128xf32>
      %cst_23 = arith.constant dense<0.000000e+00> : vector<8xf32>
      %40 = vector.multi_reduction <add>, %39, %cst_23 [1] : vector<8x128xf32> to vector<8xf32>
      %41 = vector.shape_cast %40 : vector<8xf32> to vector<8x1xf32>
      %cst_24 = arith.constant 1.280000e+02 : f32
      %42 = vector.broadcast %cst_24 : f32 to vector<8x1xf32>
      %43 = arith.divf %41, %42 : vector<8x1xf32>
      %44 = vector.broadcast %36 : vector<8x1xf32> to vector<8x128xf32>
      %45 = arith.subf %32, %44 : vector<8x128xf32>
      %cst_25 = arith.constant 9.99999974E-6 : f32
      %46 = vector.broadcast %cst_25 : f32 to vector<8x1xf32>
      %47 = arith.addf %43, %46 : vector<8x1xf32>
      %48 = math.rsqrt %47 : vector<8x1xf32>
      %49 = vector.broadcast %48 : vector<8x1xf32> to vector<8x128xf32>
      %50 = arith.mulf %45, %49 : vector<8x128xf32>
      %c0_26 = arith.constant 0 : index
      %c0_27 = arith.constant 0 : index
      %51 = vector.load %arg4[%c0_26, %c0_27] : memref<1x128xf32, #tpu.memory_space<vmem>>, vector<1x128xf32>
      %52 = vector.broadcast %51 : vector<1x128xf32> to vector<8x128xf32>
      %53 = arith.mulf %50, %52 : vector<8x128xf32>
      %c0_28 = arith.constant 0 : index
      %c0_29 = arith.constant 0 : index
      %54 = vector.load %arg5[%c0_28, %c0_29] : memref<1x128xf32, #tpu.memory_space<vmem>>, vector<1x128xf32>
      %55 = vector.broadcast %54 : vector<1x128xf32> to vector<8x128xf32>
      %56 = arith.addf %53, %55 : vector<8x128xf32>
      %57 = arith.truncf %56 : vector<8x128xf32> to vector<8x128xbf16>
      %c0_30 = arith.constant 0 : index
      %c0_31 = arith.constant 0 : index
      %58 = vector.load %arg14[%c0_30, %c0_31] : memref<8x128xbf16, #tpu.memory_space<vmem>>, vector<8x128xbf16>
      tpu.vector_store %arg14[%c0_30, %c0_31], %57 {strides = array<i32>} : memref<8x128xbf16, #tpu.memory_space<vmem>>, vector<8x128xbf16>,
      %c0_32 = arith.constant 0 : index
      %c0_33 = arith.constant 0 : index
      %59 = vector.load %arg3[%c0_32, %c0_33] : memref<8x128xbf16, #tpu.memory_space<vmem>>, vector<8x128xbf16>
      %c0_34 = arith.constant 0 : index
      %c0_35 = arith.constant 0 : index
      %60 = vector.load %arg6[%c0_34, %c0_35] : memref<128x128xbf16, #tpu.memory_space<vmem>>, vector<128x128xbf16>
      %cst_36 = arith.constant dense<0.000000e+00> : vector<8x128xf32>
      %61 = tpu.matmul %59, %60, %cst_36 {dimension_numbers = #tpu.dot_dimension_numbers<[1], [0], [0], [1], [0, 0, 1, 1], [], []>} : vector<8x128xbf16>, vector<128x128xbf16>, vector<8x128xf32> -> vector<8x128xf32>
      %c0_37 = arith.constant 0 : index
      %c0_38 = arith.constant 0 : index
      %62 = vector.load %arg7[%c0_37, %c0_38] : memref<1x128xf32, #tpu.memory_space<vmem>>, vector<1x128xf32>
      %63 = vector.broadcast %62 : vector<1x128xf32> to vector<8x128xf32>
      %64 = arith.addf %61, %63 : vector<8x128xf32>
      %c0_39 = arith.constant 0 : index
      %c0_40 = arith.constant 0 : index
      %65 = vector.load %arg13[%c0_39, %c0_40] : memref<8x128xf32, #tpu.memory_space<vmem>>, vector<8x128xf32>
      tpu.vector_store %arg13[%c0_39, %c0_40], %64 {strides = array<i32>} : memref<8x128xf32, #tpu.memory_space<vmem>>, vector<8x128xf32>,
      %cst_41 = arith.constant 0.000000e+00 : f32
      %66 = vector.broadcast %cst_41 : f32 to vector<8x128xf32>
      %c0_42 = arith.constant 0 : index
      %c0_43 = arith.constant 0 : index
      %67 = vector.load %arg15[%c0_42, %c0_43] : memref<8x128xf32, #tpu.memory_space<vmem>>, vector<8x128xf32>
      tpu.vector_store %arg15[%c0_42, %c0_43], %66 {strides = array<i32>} : memref<8x128xf32, #tpu.memory_space<vmem>>, vector<8x128xf32>,
    } else {
    }
    %c0 = arith.constant 0 : index
    %c0_1 = arith.constant 0 : index
    %3 = vector.load %arg14[%c0, %c0_1] : memref<8x128xbf16, #tpu.memory_space<vmem>>, vector<8x128xbf16>
    %c0_2 = arith.constant 0 : index
    %c0_3 = arith.constant 0 : index
    %4 = vector.load %arg8[%c0_2, %c0_3] : memref<128x256xbf16, #tpu.memory_space<vmem>>, vector<128x256xbf16>
    %cst = arith.constant dense<0.000000e+00> : vector<8x256xf32>
    %5 = tpu.matmul %3, %4, %cst {dimension_numbers = #tpu.dot_dimension_numbers<[1], [0], [0], [1], [0, 0, 1, 1], [], []>} : vector<8x128xbf16>, vector<128x256xbf16>, vector<8x256xf32> -> vector<8x256xf32>
    %c0_4 = arith.constant 0 : index
    %c0_5 = arith.constant 0 : index
    %6 = vector.load %arg9[%c0_4, %c0_5] : memref<1x256xf32, #tpu.memory_space<vmem>>, vector<1x256xf32>
    %7 = vector.broadcast %6 : vector<1x256xf32> to vector<8x256xf32>
    %8 = arith.addf %5, %7 : vector<8x256xf32>
    %cst_6 = arith.constant 5.000000e-01 : f32
    %9 = vector.broadcast %cst_6 : f32 to vector<8x256xf32>
    %10 = arith.mulf %9, %8 : vector<8x256xf32>
    %cst_7 = arith.constant 0.797884583 : f32
    %11 = vector.broadcast %cst_7 : f32 to vector<8x256xf32>
    %12 = arith.mulf %8, %11 : vector<8x256xf32>
    %cst_8 = arith.constant 4.471500e-02 : f32
    %13 = vector.broadcast %cst_8 : f32 to vector<8x256xf32>
    %14 = arith.mulf %13, %8 : vector<8x256xf32>
    %15 = arith.mulf %14, %8 : vector<8x256xf32>
    %cst_9 = arith.constant 1.000000e+00 : f32
    %16 = vector.broadcast %cst_9 : f32 to vector<8x256xf32>
    %17 = arith.addf %16, %15 : vector<8x256xf32>
    %18 = arith.mulf %12, %17 : vector<8x256xf32>
    %19 = math.tanh %18 : vector<8x256xf32>
    %cst_10 = arith.constant 1.000000e+00 : f32
    %20 = vector.broadcast %cst_10 : f32 to vector<8x256xf32>
    %21 = arith.addf %20, %19 : vector<8x256xf32>
    %22 = arith.mulf %10, %21 : vector<8x256xf32>
    %c0_11 = arith.constant 0 : index
    %c0_12 = arith.constant 0 : index
    %23 = vector.load %arg15[%c0_11, %c0_12] : memref<8x128xf32, #tpu.memory_space<vmem>>, vector<8x128xf32>
    %24 = arith.truncf %22 : vector<8x256xf32> to vector<8x256xbf16>
    %c0_13 = arith.constant 0 : index
    %c0_14 = arith.constant 0 : index
    %25 = vector.load %arg10[%c0_13, %c0_14] : memref<256x128xbf16, #tpu.memory_space<vmem>>, vector<256x128xbf16>
    %cst_15 = arith.constant dense<0.000000e+00> : vector<8x128xf32>
    %26 = tpu.matmul %24, %25, %cst_15 {dimension_numbers = #tpu.dot_dimension_numbers<[1], [0], [0], [1], [0, 0, 1, 1], [], []>} : vector<8x256xbf16>, vector<256x128xbf16>, vector<8x128xf32> -> vector<8x128xf32>
    %27 = arith.addf %23, %26 : vector<8x128xf32>
    %c0_16 = arith.constant 0 : index
    %c0_17 = arith.constant 0 : index
    %28 = vector.load %arg15[%c0_16, %c0_17] : memref<8x128xf32, #tpu.memory_space<vmem>>, vector<8x128xf32>
    tpu.vector_store %arg15[%c0_16, %c0_17], %27 {strides = array<i32>} : memref<8x128xf32, #tpu.memory_space<vmem>>, vector<8x128xf32>,
    %c1_i32 = arith.constant 1 : i32
    %29 = arith.cmpi eq, %arg1, %c1_i32 : i32
    %30 = arith.extui %29 : i1 to i32
    %c0_i32_18 = arith.constant 0 : i32
    %31 = arith.cmpi ne, %30, %c0_i32_18 : i32
    scf.if %31 {
      %c0_19 = arith.constant 0 : index
      %c0_20 = arith.constant 0 : index
      %32 = vector.load %arg15[%c0_19, %c0_20] : memref<8x128xf32, #tpu.memory_space<vmem>>, vector<8x128xf32>
      %c0_21 = arith.constant 0 : index
      %c0_22 = arith.constant 0 : index
      %33 = vector.load %arg11[%c0_21, %c0_22] : memref<1x128xf32, #tpu.memory_space<vmem>>, vector<1x128xf32>
      %34 = vector.broadcast %33 : vector<1x128xf32> to vector<8x128xf32>
      %35 = arith.addf %32, %34 : vector<8x128xf32>
      %c0_23 = arith.constant 0 : index
      %c0_24 = arith.constant 0 : index
      %36 = vector.load %arg13[%c0_23, %c0_24] : memref<8x128xf32, #tpu.memory_space<vmem>>, vector<8x128xf32>
      %37 = arith.addf %35, %36 : vector<8x128xf32>
      %c0_25 = arith.constant 0 : index
      %c0_26 = arith.constant 0 : index
      %38 = vector.load %arg2[%c0_25, %c0_26] : memref<8x128xf32, #tpu.memory_space<vmem>>, vector<8x128xf32>
      %39 = arith.addf %37, %38 : vector<8x128xf32>
      %c0_27 = arith.constant 0 : index
      %c0_28 = arith.constant 0 : index
      %40 = vector.load %arg12[%c0_27, %c0_28] : memref<8x128xf32, #tpu.memory_space<vmem>>, vector<8x128xf32>
      tpu.vector_store %arg12[%c0_27, %c0_28], %39 {strides = array<i32>} : memref<8x128xf32, #tpu.memory_space<vmem>>, vector<8x128xf32>,
    } else {
    }
    return
  }
  func.func @transform_0(%arg0: i32, %arg1: i32) -> (i32, i32) {
    %c0_i32 = arith.constant 0 : i32
    %c0_i32_0 = arith.constant 0 : i32
    return %arg0, %c0_i32 : i32, i32
  }
  func.func @transform_1(%arg0: i32, %arg1: i32) -> (i32, i32) {
    %c0_i32 = arith.constant 0 : i32
    %c0_i32_0 = arith.constant 0 : i32
    return %arg0, %c0_i32 : i32, i32
  }
  func.func @transform_2(%arg0: i32, %arg1: i32) -> (i32, i32) {
    %c0_i32 = arith.constant 0 : i32
    %c0_i32_0 = arith.constant 0 : i32
    %c0_i32_1 = arith.constant 0 : i32
    return %c0_i32, %c0_i32_0 : i32, i32
  }
  func.func @transform_3(%arg0: i32, %arg1: i32) -> (i32, i32) {
    %c0_i32 = arith.constant 0 : i32
    %c0_i32_0 = arith.constant 0 : i32
    %c0_i32_1 = arith.constant 0 : i32
    return %c0_i32, %c0_i32_0 : i32, i32
  }
  func.func @transform_4(%arg0: i32, %arg1: i32) -> (i32, i32) {
    %c0_i32 = arith.constant 0 : i32
    %c0_i32_0 = arith.constant 0 : i32
    %c0_i32_1 = arith.constant 0 : i32
    return %c0_i32, %c0_i32_0 : i32, i32
  }
  func.func @transform_5(%arg0: i32, %arg1: i32) -> (i32, i32) {
    %c0_i32 = arith.constant 0 : i32
    %c0_i32_0 = arith.constant 0 : i32
    %c0_i32_1 = arith.constant 0 : i32
    return %c0_i32, %c0_i32_0 : i32, i32
  }
  func.func @transform_6(%arg0: i32, %arg1: i32) -> (i32, i32) {
    %c0_i32 = arith.constant 0 : i32
    %c0_i32_0 = arith.constant 0 : i32
    return %c0_i32, %arg1 : i32, i32
  }
  func.func @transform_7(%arg0: i32, %arg1: i32) -> (i32, i32) {
    %c0_i32 = arith.constant 0 : i32
    %c0_i32_0 = arith.constant 0 : i32
    return %c0_i32, %arg1 : i32, i32
  }
  func.func @transform_8(%arg0: i32, %arg1: i32) -> (i32, i32) {
    %c0_i32 = arith.constant 0 : i32
    %c0_i32_0 = arith.constant 0 : i32
    return %arg1, %c0_i32 : i32, i32
  }
  func.func @transform_9(%arg0: i32, %arg1: i32) -> (i32, i32) {
    %c0_i32 = arith.constant 0 : i32
    %c0_i32_0 = arith.constant 0 : i32
    %c0_i32_1 = arith.constant 0 : i32
    return %c0_i32, %c0_i32_0 : i32, i32
  }
  func.func @transform_10(%arg0: i32, %arg1: i32) -> (i32, i32) {
    %c0_i32 = arith.constant 0 : i32
    %c0_i32_0 = arith.constant 0 : i32
    return %arg0, %c0_i32 : i32, i32
  }
}

module attributes {stable_mosaic.version = 11 : i64} {
  func.func @_flash_attn_kernel(%arg0: i32, %arg1: i32, %arg2: i32, %arg3: memref<1x8x128xbf16, #tpu.memory_space<vmem>>, %arg4: memref<1x8x128xbf16, #tpu.memory_space<vmem>>, %arg5: memref<1x8x128xbf16, #tpu.memory_space<vmem>>, %arg6: memref<1x8x128xbf16, #tpu.memory_space<vmem>>, %arg7: memref<4x8x32xbf16, #tpu.memory_space<vmem>>, %arg8: memref<4x8x1xf32, #tpu.memory_space<vmem>>, %arg9: memref<4x8x1xf32, #tpu.memory_space<vmem>>, %arg10: memref<4x8x32xf32, #tpu.memory_space<vmem>>) attributes {dimension_semantics = [#tpu.dimension_semantics<parallel>, #tpu.dimension_semantics<parallel>, #tpu.dimension_semantics<arbitrary>], iteration_bounds = array<i64: 2, 1, 1>, scalar_prefetch = 0 : i64, scratch_operands = 4 : i64, tpu.core_type = #tpu.core_type<tc>, window_params = [{transform_indices = @transform_0, window_bounds = array<i64: 1, 8, 128>}, {transform_indices = @transform_1, window_bounds = array<i64: 1, 8, 128>}, {transform_indices = @transform_2, window_bounds = array<i64: 1, 8, 128>}, {transform_indices = @transform_3, window_bounds = array<i64: 1, 8, 128>}]} {
    %c0_i32 = arith.constant 0 : i32
    %0 = arith.cmpi eq, %arg2, %c0_i32 : i32
    %1 = arith.extui %0 : i1 to i32
    %c0_i32_0 = arith.constant 0 : i32
    %2 = arith.cmpi ne, %1, %c0_i32_0 : i32
    scf.if %2 {
      %c0 = arith.constant 0 : index
      %c0_5 = arith.constant 0 : index
      %c0_6 = arith.constant 0 : index
      %12 = vector.load %arg3[%c0, %c0_5, %c0_6] : memref<1x8x128xbf16, #tpu.memory_space<vmem>>, vector<1x8x128xbf16>
      %13 = vector.shape_cast %12 : vector<1x8x128xbf16> to vector<8x128xbf16>
      %14 = vector.shape_cast %13 : vector<8x128xbf16> to vector<8x4x32xbf16>
      %15 = tpu.transpose %14, [1, 0, 2] : vector<8x4x32xbf16> -> vector<4x8x32xbf16>
      %c0_7 = arith.constant 0 : index
      %c0_8 = arith.constant 0 : index
      %c0_9 = arith.constant 0 : index
      %16 = vector.load %arg7[%c0_7, %c0_8, %c0_9] : memref<4x8x32xbf16, #tpu.memory_space<vmem>>, vector<4x8x32xbf16>
      tpu.vector_store %arg7[%c0_7, %c0_8, %c0_9], %15 {strides = array<i32>} : memref<4x8x32xbf16, #tpu.memory_space<vmem>>, vector<4x8x32xbf16>,
      %cst = arith.constant 0xFF800000 : f32
      %17 = vector.broadcast %cst : f32 to vector<4x8x1xf32>
      %c0_10 = arith.constant 0 : index
      %c0_11 = arith.constant 0 : index
      %c0_12 = arith.constant 0 : index
      %18 = vector.load %arg8[%c0_10, %c0_11, %c0_12] : memref<4x8x1xf32, #tpu.memory_space<vmem>>, vector<4x8x1xf32>
      tpu.vector_store %arg8[%c0_10, %c0_11, %c0_12], %17 {strides = array<i32>} : memref<4x8x1xf32, #tpu.memory_space<vmem>>, vector<4x8x1xf32>,
      %cst_13 = arith.constant 0.000000e+00 : f32
      %19 = vector.broadcast %cst_13 : f32 to vector<4x8x1xf32>
      %c0_14 = arith.constant 0 : index
      %c0_15 = arith.constant 0 : index
      %c0_16 = arith.constant 0 : index
      %20 = vector.load %arg9[%c0_14, %c0_15, %c0_16] : memref<4x8x1xf32, #tpu.memory_space<vmem>>, vector<4x8x1xf32>
      tpu.vector_store %arg9[%c0_14, %c0_15, %c0_16], %19 {strides = array<i32>} : memref<4x8x1xf32, #tpu.memory_space<vmem>>, vector<4x8x1xf32>,
      %cst_17 = arith.constant 0.000000e+00 : f32
      %21 = vector.broadcast %cst_17 : f32 to vector<4x8x32xf32>
      %c0_18 = arith.constant 0 : index
      %c0_19 = arith.constant 0 : index
      %c0_20 = arith.constant 0 : index
      %22 = vector.load %arg10[%c0_18, %c0_19, %c0_20] : memref<4x8x32xf32, #tpu.memory_space<vmem>>, vector<4x8x32xf32>
      tpu.vector_store %arg10[%c0_18, %c0_19, %c0_20], %21 {strides = array<i32>} : memref<4x8x32xf32, #tpu.memory_space<vmem>>, vector<4x8x32xf32>,
    } else {
    }
    %c8_i32 = arith.constant 8 : i32
    %3 = arith.muli %arg2, %c8_i32 : i32
    %c8_i32_1 = arith.constant 8 : i32
    %4 = arith.muli %arg1, %c8_i32_1 : i32
    %c7_i32 = arith.constant 7 : i32
    %5 = arith.addi %4, %c7_i32 : i32
    %6 = arith.cmpi sle, %3, %5 : i32
    %7 = arith.extui %6 : i1 to i32
    %c0_i32_2 = arith.constant 0 : i32
    %8 = arith.cmpi ne, %7, %c0_i32_2 : i32
    scf.if %8 {
      %c0 = arith.constant 0 : index
      %c0_5 = arith.constant 0 : index
      %c0_6 = arith.constant 0 : index
      %12 = vector.load %arg4[%c0, %c0_5, %c0_6] : memref<1x8x128xbf16, #tpu.memory_space<vmem>>, vector<1x8x128xbf16>
      %13 = vector.shape_cast %12 : vector<1x8x128xbf16> to vector<8x128xbf16>
      %14 = vector.shape_cast %13 : vector<8x128xbf16> to vector<8x4x32xbf16>
      %15 = tpu.transpose %14, [1, 0, 2] : vector<8x4x32xbf16> -> vector<4x8x32xbf16>
      %c0_7 = arith.constant 0 : index
      %c0_8 = arith.constant 0 : index
      %c0_9 = arith.constant 0 : index
      %16 = vector.load %arg5[%c0_7, %c0_8, %c0_9] : memref<1x8x128xbf16, #tpu.memory_space<vmem>>, vector<1x8x128xbf16>
      %17 = vector.shape_cast %16 : vector<1x8x128xbf16> to vector<8x128xbf16>
      %18 = vector.shape_cast %17 : vector<8x128xbf16> to vector<8x4x32xbf16>
      %19 = tpu.transpose %18, [1, 0, 2] : vector<8x4x32xbf16> -> vector<4x8x32xbf16>
      %c0_10 = arith.constant 0 : index
      %c0_11 = arith.constant 0 : index
      %c0_12 = arith.constant 0 : index
      %20 = vector.load %arg7[%c0_10, %c0_11, %c0_12] : memref<4x8x32xbf16, #tpu.memory_space<vmem>>, vector<4x8x32xbf16>
      "tpu.trace_start"() <{level = 10 : i32, message = "hqd,hkd->hqk"}> : () -> ()
      %cst = arith.constant dense<0.000000e+00> : vector<4x8x8xf32>
      %21 = tpu.matmul %20, %15, %cst {dimension_numbers = #tpu.dot_dimension_numbers<[2], [2], [1], [1], [0, 0, 0, 1, 1, 1], [0], [0]>} : vector<4x8x32xbf16>, vector<4x8x32xbf16>, vector<4x8x8xf32> -> vector<4x8x8xf32>
      "tpu.trace_stop"() : () -> ()
      %c8_i32_13 = arith.constant 8 : i32
      %22 = arith.muli %arg1, %c8_i32_13 : i32
      %23 = tpu.iota {dimensions = array<i32: 1>} : vector<1x8x8xi32>
      %24 = vector.broadcast %22 : i32 to vector<1x8x8xi32>
      %25 = arith.addi %24, %23 : vector<1x8x8xi32>
      %c8_i32_14 = arith.constant 8 : i32
      %26 = arith.muli %arg2, %c8_i32_14 : i32
      %27 = tpu.iota {dimensions = array<i32: 2>} : vector<1x8x8xi32>
      %28 = vector.broadcast %26 : i32 to vector<1x8x8xi32>
      %29 = arith.addi %28, %27 : vector<1x8x8xi32>
      %30 = arith.cmpi sle, %29, %25 : vector<1x8x8xi32>
      %cst_15 = arith.constant -1.000000e+30 : f32
      %31 = vector.shape_cast %30 : vector<1x8x8xi1> to vector<1x8x8xi1>
      %32 = vector.broadcast %31 : vector<1x8x8xi1> to vector<4x8x8xi1>
      %33 = vector.broadcast %cst_15 : f32 to vector<4x8x8xf32>
      %34 = arith.select %32, %21, %33 : vector<4x8x8xi1>, vector<4x8x8xf32>
      %c0_16 = arith.constant 0 : index
      %c0_17 = arith.constant 0 : index
      %c0_18 = arith.constant 0 : index
      %35 = vector.load %arg8[%c0_16, %c0_17, %c0_18] : memref<4x8x1xf32, #tpu.memory_space<vmem>>, vector<4x8x1xf32>
      %cst_19 = arith.constant dense<0xFF800000> : vector<4x8xf32>
      %36 = vector.multi_reduction <maximumf>, %34, %cst_19 [2] : vector<4x8x8xf32> to vector<4x8xf32>
      %37 = vector.shape_cast %36 : vector<4x8xf32> to vector<4x8x1xf32>
      %38 = arith.maximumf %35, %37 : vector<4x8x1xf32>
      %39 = arith.subf %35, %38 : vector<4x8x1xf32>
      %40 = math.exp %39 : vector<4x8x1xf32>
      %41 = vector.broadcast %38 : vector<4x8x1xf32> to vector<4x8x8xf32>
      %42 = arith.subf %34, %41 : vector<4x8x8xf32>
      %43 = math.exp %42 : vector<4x8x8xf32>
      %c0_20 = arith.constant 0 : index
      %c0_21 = arith.constant 0 : index
      %c0_22 = arith.constant 0 : index
      %44 = vector.load %arg9[%c0_20, %c0_21, %c0_22] : memref<4x8x1xf32, #tpu.memory_space<vmem>>, vector<4x8x1xf32>
      %45 = arith.mulf %40, %44 : vector<4x8x1xf32>
      %cst_23 = arith.constant dense<0.000000e+00> : vector<4x8xf32>
      %46 = vector.multi_reduction <add>, %43, %cst_23 [2] : vector<4x8x8xf32> to vector<4x8xf32>
      %47 = vector.shape_cast %46 : vector<4x8xf32> to vector<4x8x1xf32>
      %48 = arith.addf %45, %47 : vector<4x8x1xf32>
      %c0_24 = arith.constant 0 : index
      %c0_25 = arith.constant 0 : index
      %c0_26 = arith.constant 0 : index
      %49 = vector.load %arg9[%c0_24, %c0_25, %c0_26] : memref<4x8x1xf32, #tpu.memory_space<vmem>>, vector<4x8x1xf32>
      tpu.vector_store %arg9[%c0_24, %c0_25, %c0_26], %48 {strides = array<i32>} : memref<4x8x1xf32, #tpu.memory_space<vmem>>, vector<4x8x1xf32>,
      %c0_27 = arith.constant 0 : index
      %c0_28 = arith.constant 0 : index
      %c0_29 = arith.constant 0 : index
      %50 = vector.load %arg10[%c0_27, %c0_28, %c0_29] : memref<4x8x32xf32, #tpu.memory_space<vmem>>, vector<4x8x32xf32>
      %51 = vector.broadcast %40 : vector<4x8x1xf32> to vector<4x8x32xf32>
      %52 = arith.mulf %51, %50 : vector<4x8x32xf32>
      %53 = arith.truncf %43 : vector<4x8x8xf32> to vector<4x8x8xbf16>
      "tpu.trace_start"() <{level = 10 : i32, message = "hqk,hkd->hqd"}> : () -> ()
      %cst_30 = arith.constant dense<0.000000e+00> : vector<4x8x32xf32>
      %54 = tpu.matmul %53, %19, %cst_30 {dimension_numbers = #tpu.dot_dimension_numbers<[2], [1], [1], [2], [0, 0, 0, 1, 1, 2], [0], [0]>} : vector<4x8x8xbf16>, vector<4x8x32xbf16>, vector<4x8x32xf32> -> vector<4x8x32xf32>
      "tpu.trace_stop"() : () -> ()
      %55 = arith.addf %52, %54 : vector<4x8x32xf32>
      %c0_31 = arith.constant 0 : index
      %c0_32 = arith.constant 0 : index
      %c0_33 = arith.constant 0 : index
      %56 = vector.load %arg10[%c0_31, %c0_32, %c0_33] : memref<4x8x32xf32, #tpu.memory_space<vmem>>, vector<4x8x32xf32>
      tpu.vector_store %arg10[%c0_31, %c0_32, %c0_33], %55 {strides = array<i32>} : memref<4x8x32xf32, #tpu.memory_space<vmem>>, vector<4x8x32xf32>,
      %c0_34 = arith.constant 0 : index
      %c0_35 = arith.constant 0 : index
      %c0_36 = arith.constant 0 : index
      %57 = vector.load %arg8[%c0_34, %c0_35, %c0_36] : memref<4x8x1xf32, #tpu.memory_space<vmem>>, vector<4x8x1xf32>
      tpu.vector_store %arg8[%c0_34, %c0_35, %c0_36], %38 {strides = array<i32>} : memref<4x8x1xf32, #tpu.memory_space<vmem>>, vector<4x8x1xf32>,
    } else {
    }
    %c0_i32_3 = arith.constant 0 : i32
    %9 = arith.cmpi eq, %arg2, %c0_i32_3 : i32
    %10 = arith.extui %9 : i1 to i32
    %c0_i32_4 = arith.constant 0 : i32
    %11 = arith.cmpi ne, %10, %c0_i32_4 : i32
    scf.if %11 {
      %c0 = arith.constant 0 : index
      %c0_5 = arith.constant 0 : index
      %c0_6 = arith.constant 0 : index
      %12 = vector.load %arg10[%c0, %c0_5, %c0_6] : memref<4x8x32xf32, #tpu.memory_space<vmem>>, vector<4x8x32xf32>
      %c0_7 = arith.constant 0 : index
      %c0_8 = arith.constant 0 : index
      %c0_9 = arith.constant 0 : index
      %13 = vector.load %arg9[%c0_7, %c0_8, %c0_9] : memref<4x8x1xf32, #tpu.memory_space<vmem>>, vector<4x8x1xf32>
      %14 = tpu.reciprocal %13 {approx = true} : vector<4x8x1xf32> -> vector<4x8x1xf32>
      %15 = vector.broadcast %14 : vector<4x8x1xf32> to vector<4x8x32xf32>
      %16 = arith.mulf %12, %15 : vector<4x8x32xf32>
      %17 = tpu.transpose %16, [1, 0, 2] : vector<4x8x32xf32> -> vector<8x4x32xf32>
      %18 = vector.shape_cast %17 : vector<8x4x32xf32> to vector<8x128xf32>
      %19 = arith.truncf %18 : vector<8x128xf32> to vector<8x128xbf16>
      %c0_10 = arith.constant 0 : index
      %c0_11 = arith.constant 0 : index
      %c0_12 = arith.constant 0 : index
      %20 = vector.load %arg6[%c0_10, %c0_11, %c0_12] : memref<1x8x128xbf16, #tpu.memory_space<vmem>>, vector<1x8x128xbf16>
      %21 = vector.shape_cast %20 : vector<1x8x128xbf16> to vector<8x128xbf16>
      %22 = vector.shape_cast %19 : vector<8x128xbf16> to vector<1x8x128xbf16>
      tpu.vector_store %arg6[%c0_10, %c0_11, %c0_12], %22 {strides = array<i32>} : memref<1x8x128xbf16, #tpu.memory_space<vmem>>, vector<1x8x128xbf16>,
    } else {
    }
    return
  }
  func.func @transform_0(%arg0: i32, %arg1: i32, %arg2: i32) -> (i32, i32, i32) {
    %c0_i32 = arith.constant 0 : i32
    %c0_i32_0 = arith.constant 0 : i32
    return %arg0, %arg1, %c0_i32 : i32, i32, i32
  }
  func.func @transform_1(%arg0: i32, %arg1: i32, %arg2: i32) -> (i32, i32, i32) {
    %c0_i32 = arith.constant 0 : i32
    %c0_i32_0 = arith.constant 0 : i32
    return %arg0, %arg2, %c0_i32 : i32, i32, i32
  }
  func.func @transform_2(%arg0: i32, %arg1: i32, %arg2: i32) -> (i32, i32, i32) {
    %c0_i32 = arith.constant 0 : i32
    %c0_i32_0 = arith.constant 0 : i32
    return %arg0, %arg2, %c0_i32 : i32, i32, i32
  }
  func.func @transform_3(%arg0: i32, %arg1: i32, %arg2: i32) -> (i32, i32, i32) {
    %c0_i32 = arith.constant 0 : i32
    %c0_i32_0 = arith.constant 0 : i32
    return %arg0, %arg1, %c0_i32 : i32, i32, i32
  }
}

module attributes {stable_mosaic.version = 11 : i64} {
  func.func @_qkv_rope_kernel(%arg0: i32, %arg1: i32, %arg2: memref<1x8x128xf32, #tpu.memory_space<vmem>>, %arg3: memref<1x128xf32, #tpu.memory_space<vmem>>, %arg4: memref<1x128xf32, #tpu.memory_space<vmem>>, %arg5: memref<128x384xbf16, #tpu.memory_space<vmem>>, %arg6: memref<1x384xf32, #tpu.memory_space<vmem>>, %arg7: memref<8x128xf32, #tpu.memory_space<vmem>>, %arg8: memref<8x128xf32, #tpu.memory_space<vmem>>, %arg9: memref<8x128xf32, #tpu.memory_space<vmem>>, %arg10: memref<1x8x128xbf16, #tpu.memory_space<vmem>>, %arg11: memref<1x8x128xbf16, #tpu.memory_space<vmem>>, %arg12: memref<1x8x128xbf16, #tpu.memory_space<vmem>>) attributes {dimension_semantics = [#tpu.dimension_semantics<parallel>, #tpu.dimension_semantics<parallel>], iteration_bounds = array<i64: 2, 1>, scalar_prefetch = 0 : i64, scratch_operands = 0 : i64, tpu.core_type = #tpu.core_type<tc>, window_params = [{transform_indices = @transform_0, window_bounds = array<i64: 1, 8, 128>}, {pipeline_mode = #tpu.pipeline_mode<synchronous>, transform_indices = @transform_1, window_bounds = array<i64: 1, 128>}, {pipeline_mode = #tpu.pipeline_mode<synchronous>, transform_indices = @transform_2, window_bounds = array<i64: 1, 128>}, {pipeline_mode = #tpu.pipeline_mode<synchronous>, transform_indices = @transform_3, window_bounds = array<i64: 128, 384>}, {pipeline_mode = #tpu.pipeline_mode<synchronous>, transform_indices = @transform_4, window_bounds = array<i64: 1, 384>}, {transform_indices = @transform_5, window_bounds = array<i64: 8, 128>}, {transform_indices = @transform_6, window_bounds = array<i64: 8, 128>}, {transform_indices = @transform_7, window_bounds = array<i64: 8, 128>}, {transform_indices = @transform_8, window_bounds = array<i64: 1, 8, 128>}, {transform_indices = @transform_9, window_bounds = array<i64: 1, 8, 128>}, {transform_indices = @transform_10, window_bounds = array<i64: 1, 8, 128>}]} {
    %c0 = arith.constant 0 : index
    %c0_0 = arith.constant 0 : index
    %c0_1 = arith.constant 0 : index
    %0 = vector.load %arg2[%c0, %c0_0, %c0_1] : memref<1x8x128xf32, #tpu.memory_space<vmem>>, vector<1x8x128xf32>
    %1 = vector.shape_cast %0 : vector<1x8x128xf32> to vector<8x128xf32>
    %cst = arith.constant dense<0.000000e+00> : vector<8xf32>
    %2 = vector.multi_reduction <add>, %1, %cst [1] : vector<8x128xf32> to vector<8xf32>
    %3 = vector.shape_cast %2 : vector<8xf32> to vector<8x1xf32>
    %cst_2 = arith.constant 1.280000e+02 : f32
    %4 = vector.broadcast %cst_2 : f32 to vector<8x1xf32>
    %5 = arith.divf %3, %4 : vector<8x1xf32>
    %6 = vector.broadcast %5 : vector<8x1xf32> to vector<8x128xf32>
    %7 = arith.subf %1, %6 : vector<8x128xf32>
    %8 = arith.mulf %7, %7 : vector<8x128xf32>
    %cst_3 = arith.constant dense<0.000000e+00> : vector<8xf32>
    %9 = vector.multi_reduction <add>, %8, %cst_3 [1] : vector<8x128xf32> to vector<8xf32>
    %10 = vector.shape_cast %9 : vector<8xf32> to vector<8x1xf32>
    %cst_4 = arith.constant 1.280000e+02 : f32
    %11 = vector.broadcast %cst_4 : f32 to vector<8x1xf32>
    %12 = arith.divf %10, %11 : vector<8x1xf32>
    %13 = vector.broadcast %5 : vector<8x1xf32> to vector<8x128xf32>
    %14 = arith.subf %1, %13 : vector<8x128xf32>
    %cst_5 = arith.constant 9.99999974E-6 : f32
    %15 = vector.broadcast %cst_5 : f32 to vector<8x1xf32>
    %16 = arith.addf %12, %15 : vector<8x1xf32>
    %17 = math.rsqrt %16 : vector<8x1xf32>
    %18 = vector.broadcast %17 : vector<8x1xf32> to vector<8x128xf32>
    %19 = arith.mulf %14, %18 : vector<8x128xf32>
    %c0_6 = arith.constant 0 : index
    %c0_7 = arith.constant 0 : index
    %20 = vector.load %arg3[%c0_6, %c0_7] : memref<1x128xf32, #tpu.memory_space<vmem>>, vector<1x128xf32>
    %21 = vector.broadcast %20 : vector<1x128xf32> to vector<8x128xf32>
    %22 = arith.mulf %19, %21 : vector<8x128xf32>
    %c0_8 = arith.constant 0 : index
    %c0_9 = arith.constant 0 : index
    %23 = vector.load %arg4[%c0_8, %c0_9] : memref<1x128xf32, #tpu.memory_space<vmem>>, vector<1x128xf32>
    %24 = vector.broadcast %23 : vector<1x128xf32> to vector<8x128xf32>
    %25 = arith.addf %22, %24 : vector<8x128xf32>
    %26 = arith.truncf %25 : vector<8x128xf32> to vector<8x128xbf16>
    %c0_10 = arith.constant 0 : index
    %c0_11 = arith.constant 0 : index
    %27 = vector.load %arg5[%c0_10, %c0_11] : memref<128x384xbf16, #tpu.memory_space<vmem>>, vector<128x384xbf16>
    %cst_12 = arith.constant dense<0.000000e+00> : vector<8x384xf32>
    %28 = tpu.matmul %26, %27, %cst_12 {dimension_numbers = #tpu.dot_dimension_numbers<[1], [0], [0], [1], [0, 0, 1, 1], [], []>} : vector<8x128xbf16>, vector<128x384xbf16>, vector<8x384xf32> -> vector<8x384xf32>
    %c0_13 = arith.constant 0 : index
    %c0_14 = arith.constant 0 : index
    %29 = vector.load %arg6[%c0_13, %c0_14] : memref<1x384xf32, #tpu.memory_space<vmem>>, vector<1x384xf32>
    %30 = vector.broadcast %29 : vector<1x384xf32> to vector<8x384xf32>
    %31 = arith.addf %28, %30 : vector<8x384xf32>
    %32 = vector.extract_strided_slice %31 {offsets = [0, 0], sizes = [8, 128], strides = [1, 1]} : vector<8x384xf32> to vector<8x128xf32>
    %33 = vector.extract_strided_slice %31 {offsets = [0, 128], sizes = [8, 128], strides = [1, 1]} : vector<8x384xf32> to vector<8x128xf32>
    %34 = vector.extract_strided_slice %31 {offsets = [0, 256], sizes = [8, 128], strides = [1, 1]} : vector<8x384xf32> to vector<8x128xf32>
    %c0_15 = arith.constant 0 : index
    %c0_16 = arith.constant 0 : index
    %35 = vector.load %arg7[%c0_15, %c0_16] : memref<8x128xf32, #tpu.memory_space<vmem>>, vector<8x128xf32>
    %c0_17 = arith.constant 0 : index
    %c0_18 = arith.constant 0 : index
    %36 = vector.load %arg8[%c0_17, %c0_18] : memref<8x128xf32, #tpu.memory_space<vmem>>, vector<8x128xf32>
    %c0_19 = arith.constant 0 : index
    %c0_20 = arith.constant 0 : index
    %37 = vector.load %arg9[%c0_19, %c0_20] : memref<8x128xf32, #tpu.memory_space<vmem>>, vector<8x128xf32>
    %cst_21 = arith.constant 3.200000e+01 : f32
    %38 = math.sqrt %cst_21 : f32
    %cst_22 = arith.constant 1.000000e+00 : f32
    %39 = arith.divf %cst_22, %38 : f32
    %40 = arith.mulf %32, %35 : vector<8x128xf32>
    %c4_i32 = arith.constant 4 : i32
    %41 = tpu.dynamic_rotate %32 by %c4_i32 dim 1 : vector<8x128xf32>, i32 -> vector<8x128xf32>
    %42 = arith.mulf %41, %36 : vector<8x128xf32>
    %43 = arith.addf %40, %42 : vector<8x128xf32>
    %c124_i32 = arith.constant 124 : i32
    %44 = tpu.dynamic_rotate %32 by %c124_i32 dim 1 : vector<8x128xf32>, i32 -> vector<8x128xf32>
    %45 = arith.mulf %44, %37 : vector<8x128xf32>
    %46 = arith.addf %43, %45 : vector<8x128xf32>
    %47 = vector.broadcast %39 : f32 to vector<8x128xf32>
    %48 = arith.mulf %46, %47 : vector<8x128xf32>
    %49 = arith.truncf %48 : vector<8x128xf32> to vector<8x128xbf16>
    %c0_23 = arith.constant 0 : index
    %c0_24 = arith.constant 0 : index
    %c0_25 = arith.constant 0 : index
    %50 = vector.load %arg10[%c0_23, %c0_24, %c0_25] : memref<1x8x128xbf16, #tpu.memory_space<vmem>>, vector<1x8x128xbf16>
    %51 = vector.shape_cast %50 : vector<1x8x128xbf16> to vector<8x128xbf16>
    %52 = vector.shape_cast %49 : vector<8x128xbf16> to vector<1x8x128xbf16>
    tpu.vector_store %arg10[%c0_23, %c0_24, %c0_25], %52 {strides = array<i32>} : memref<1x8x128xbf16, #tpu.memory_space<vmem>>, vector<1x8x128xbf16>,
    %53 = arith.mulf %33, %35 : vector<8x128xf32>
    %c4_i32_26 = arith.constant 4 : i32
    %54 = tpu.dynamic_rotate %33 by %c4_i32_26 dim 1 : vector<8x128xf32>, i32 -> vector<8x128xf32>
    %55 = arith.mulf %54, %36 : vector<8x128xf32>
    %56 = arith.addf %53, %55 : vector<8x128xf32>
    %c124_i32_27 = arith.constant 124 : i32
    %57 = tpu.dynamic_rotate %33 by %c124_i32_27 dim 1 : vector<8x128xf32>, i32 -> vector<8x128xf32>
    %58 = arith.mulf %57, %37 : vector<8x128xf32>
    %59 = arith.addf %56, %58 : vector<8x128xf32>
    %60 = arith.truncf %59 : vector<8x128xf32> to vector<8x128xbf16>
    %c0_28 = arith.constant 0 : index
    %c0_29 = arith.constant 0 : index
    %c0_30 = arith.constant 0 : index
    %61 = vector.load %arg11[%c0_28, %c0_29, %c0_30] : memref<1x8x128xbf16, #tpu.memory_space<vmem>>, vector<1x8x128xbf16>
    %62 = vector.shape_cast %61 : vector<1x8x128xbf16> to vector<8x128xbf16>
    %63 = vector.shape_cast %60 : vector<8x128xbf16> to vector<1x8x128xbf16>
    tpu.vector_store %arg11[%c0_28, %c0_29, %c0_30], %63 {strides = array<i32>} : memref<1x8x128xbf16, #tpu.memory_space<vmem>>, vector<1x8x128xbf16>,
    %64 = arith.truncf %34 : vector<8x128xf32> to vector<8x128xbf16>
    %c0_31 = arith.constant 0 : index
    %c0_32 = arith.constant 0 : index
    %c0_33 = arith.constant 0 : index
    %65 = vector.load %arg12[%c0_31, %c0_32, %c0_33] : memref<1x8x128xbf16, #tpu.memory_space<vmem>>, vector<1x8x128xbf16>
    %66 = vector.shape_cast %65 : vector<1x8x128xbf16> to vector<8x128xbf16>
    %67 = vector.shape_cast %64 : vector<8x128xbf16> to vector<1x8x128xbf16>
    tpu.vector_store %arg12[%c0_31, %c0_32, %c0_33], %67 {strides = array<i32>} : memref<1x8x128xbf16, #tpu.memory_space<vmem>>, vector<1x8x128xbf16>,
    return
  }
  func.func @transform_0(%arg0: i32, %arg1: i32) -> (i32, i32, i32) {
    %c0_i32 = arith.constant 0 : i32
    %c0_i32_0 = arith.constant 0 : i32
    return %arg0, %arg1, %c0_i32 : i32, i32, i32
  }
  func.func @transform_1(%arg0: i32, %arg1: i32) -> (i32, i32) {
    %c0_i32 = arith.constant 0 : i32
    %c0_i32_0 = arith.constant 0 : i32
    %c0_i32_1 = arith.constant 0 : i32
    return %c0_i32, %c0_i32_0 : i32, i32
  }
  func.func @transform_2(%arg0: i32, %arg1: i32) -> (i32, i32) {
    %c0_i32 = arith.constant 0 : i32
    %c0_i32_0 = arith.constant 0 : i32
    %c0_i32_1 = arith.constant 0 : i32
    return %c0_i32, %c0_i32_0 : i32, i32
  }
  func.func @transform_3(%arg0: i32, %arg1: i32) -> (i32, i32) {
    %c0_i32 = arith.constant 0 : i32
    %c0_i32_0 = arith.constant 0 : i32
    %c0_i32_1 = arith.constant 0 : i32
    return %c0_i32, %c0_i32_0 : i32, i32
  }
  func.func @transform_4(%arg0: i32, %arg1: i32) -> (i32, i32) {
    %c0_i32 = arith.constant 0 : i32
    %c0_i32_0 = arith.constant 0 : i32
    %c0_i32_1 = arith.constant 0 : i32
    return %c0_i32, %c0_i32_0 : i32, i32
  }
  func.func @transform_5(%arg0: i32, %arg1: i32) -> (i32, i32) {
    %c0_i32 = arith.constant 0 : i32
    %c0_i32_0 = arith.constant 0 : i32
    return %arg1, %c0_i32 : i32, i32
  }
  func.func @transform_6(%arg0: i32, %arg1: i32) -> (i32, i32) {
    %c0_i32 = arith.constant 0 : i32
    %c0_i32_0 = arith.constant 0 : i32
    return %arg1, %c0_i32 : i32, i32
  }
  func.func @transform_7(%arg0: i32, %arg1: i32) -> (i32, i32) {
    %c0_i32 = arith.constant 0 : i32
    %c0_i32_0 = arith.constant 0 : i32
    return %arg1, %c0_i32 : i32, i32
  }
  func.func @transform_8(%arg0: i32, %arg1: i32) -> (i32, i32, i32) {
    %c0_i32 = arith.constant 0 : i32
    %c0_i32_0 = arith.constant 0 : i32
    return %arg0, %arg1, %c0_i32 : i32, i32, i32
  }
  func.func @transform_9(%arg0: i32, %arg1: i32) -> (i32, i32, i32) {
    %c0_i32 = arith.constant 0 : i32
    %c0_i32_0 = arith.constant 0 : i32
    return %arg0, %arg1, %c0_i32 : i32, i32, i32
  }
  func.func @transform_10(%arg0: i32, %arg1: i32) -> (i32, i32, i32) {
    %c0_i32 = arith.constant 0 : i32
    %c0_i32_0 = arith.constant 0 : i32
    return %arg0, %arg1, %c0_i32 : i32, i32, i32
  }
}

</mosaic_0001>

<bundles_post_ra>
// kernel: gpt_neox_layer_forward.3
= control target key start
LH: loop header
LB: loop body
LE: loop exit
PB: predicated region body
PF: predicated region fallthrough
CT: control target
= control target key end

     0   :  { %s1916_s0 = inlined_call_operand.hbm [shape: f32[2,8,128], index: 0, kind: input, shape index: {}]   ;;  %s1917_s1 = inlined_call_operand.hbm [shape: f32[1,128], index: 1, kind: input, shape index: {}]   ;;  %s1918_s2 = inlined_call_operand.hbm [shape: f32[1,128], index: 2, kind: input, shape index: {}]   ;;  %s1919_s3 = inlined_call_operand.hbm [shape: bf16[128,384], index: 3, kind: input, shape index: {}]   ;;  %s1920_s4 = inlined_call_operand.hbm [shape: f32[1,384], index: 4, kind: input, shape index: {}]   ;;  %s1921_s5 = inlined_call_operand.hbm [shape: f32[8,128], index: 5, kind: input, shape index: {}]   ;;  %s1922_s6 = inlined_call_operand.hbm [shape: f32[8,128], index: 6, kind: input, shape index: {}]   ;;  %s1923_s7 = inlined_call_operand.hbm [shape: f32[8,128], index: 7, kind: input, shape index: {}]   ;;  %s1924_s8 = inlined_call_operand.vmem [shape: bf16[2,8,128], index: 8, kind: output, shape index: {0}]   ;;  %s1925_s9 = inlined_call_operand.vmem [shape: bf16[2,8,128], index: 9, kind: output, shape index: {1}]   ;;  %s1926_s10 = inlined_call_operand.vmem [shape: bf16[2,8,128], index: 10, kind: output, shape index: {2}]  }
   0x1   :  { %1927 = sst [smem:[#allocation20_spill]] %s1917_s1 }
   0x2   :  { %1928 = sst [smem:[#allocation21_spill]] %s1918_s2 }
   0x3   :  { %1929 = sst [smem:[#allocation22_spill]] %s1919_s3 }
   0x4   :  { %1930 = sst [smem:[#allocation23_spill]] %s1924_s8 }
   0x5   :  { %1931 = sst [smem:[#allocation24_spill]] %s1925_s9 }
   0x6   :  { %16 = vsyncpa [#allocation3], 0 }
   0x7   :  { %18 = vsyncpa [#allocation3 + $0x1], 0 }
   0x8   :  { %19 = vsyncpa [#allocation5], 0 }
   0x9   :  { %20 = vsyncpa [#allocation8], 0 }
   0xa   :  { %21 = vsyncpa [#allocation11], 0 }
   0xb   :  { %22 = vsyncpa [#allocation14], 0  ;;  %s1734_s13 = smov 0   ;;  %s1736_s14 = smov 0  }
   0xc   :  { %s1738_s15 = smov 0   ;;  %s1740_s16 = smov 0  }
   0xd   :  { %s1742_s17 = smov 0   ;;  %s1744_s18 = smov 0  }
   0xe LB: > { %s1075_s19 = sadd.s32 4294967295, %s1665_s18   ;;  %p1077_p0 = scmp.ge.s32.totalorder %s1665_s18, 1  ;;  %s1665_s18 = sphi %s1744_s18, %s28_s18   ;;  %s1661_s17 = sphi %s1742_s17, %s1946_s17   ;;  %s1657_s16 = sphi %s1740_s16, %s1945_s16   ;;  %s1653_s15 = sphi %s1738_s15, %s1944_s15   ;;  %s1649_s14 = sphi %s1736_s14, %s1943_s14   ;;  %s1645_s13 = sphi %s1734_s13, %s1942_s13  }
   0xf   : > { %p1766_p1 = scmp.eq.s32.totalorder %s1075_s19, 0  ;;  %p319_p2 = scmp.lt.s32.totalorder %s1665_s18, 3 }
  0x10   : > { %s1933_s1 = sld [smem:[#allocation20_spill]]  ;;  %s1667_s25 = smov [#allocation4]  }
  0x11   : > { %p1774_p3 = pnand %p1077_p0, %p319_p2  ;;  %s333_s26 = sshll.u32 %s1667_s25, 4  ;;  %s334_s26 = int_to_ptr.vmem [resolvable:$true] %s333_s26 }
  0x12   : > { %s1935_s3 = sld [smem:[#allocation22_spill]]  ;;  %s1668_s11 = smov [#allocation7]  }
  0x13   : > { %p1252_p4 = pneg %p1774_p3  ;;  %s356_s12 = sshll.u32 %s1668_s11, 4  ;;  %s357_s12 = int_to_ptr.vmem [resolvable:$true] %s356_s12 }
  0x14   : > { %s1669_s19 = smov 192   ;;  %s1670_s21 = smov 12  }
  0x15   : > { %p1785_p5 = pnand %p1252_p4, %p1766_p1  ;;  %s383_s27 = sshll.u32 %s1921_s5, 4  ;;  %s384_s27 = int_to_ptr.hbm [resolvable:$true] %s383_s27 }
  0x16   : > { %s331_s23 = sshll.u32 %s1933_s1, 4  ;;  %s1671_s28 = smov [#allocation10]   ;;  %s332_s23 = int_to_ptr.hbm [resolvable:$true] %s331_s23 }
  0x17   : > { %1255 = dma.hbm_to_vmem [thread:$0]  (!%p1785_p5), %s332_s23, 16, %s334_s26, [#allocation5]  }
  0x18   : > { %s354_s29 = sshll.u32 %s1935_s3, 4  ;;  %s385_s1 = sshll.u32 %s1671_s28, 4  ;;  %s355_s29 = int_to_ptr.hbm [resolvable:$true] %s354_s29  ;;  %s386_s1 = int_to_ptr.vmem [resolvable:$true] %s385_s1 }
  0x19   : > { %1261 = dma.hbm_to_vmem [thread:$0]  (!%p1785_p5), %s355_s29, 3072, %s357_s12, [#allocation8], %s1669_s19, %s1669_s19, %s1670_s21  }
  0x1a   : > { %s1937_s2 = sld [smem:[#allocation21_spill]]  ;;  %s1672_s23 = smov [#allocation6]  }
  0x1b   : > { %1267 = dma.hbm_to_vmem [thread:$0]  (!%p1785_p5), %s384_s27, 128, %s386_s1, [#allocation11]  }
  0x1c   : > { %s345_s26 = sshll.u32 %s1672_s23, 4  ;;  %s369_s12 = sshll.u32 %s1920_s4, 4  ;;  %s346_s26 = int_to_ptr.vmem [resolvable:$true] %s345_s26  ;;  %s370_s12 = int_to_ptr.hbm [resolvable:$true] %s369_s12 }
  0x1d   : > { %s397_s3 = sshll.u32 %s1922_s6, 4  ;;  %s1673_s8 = smov [#allocation9]   ;;  %s398_s3 = int_to_ptr.hbm [resolvable:$true] %s397_s3 }
  0x1e   : > { %s371_s1 = sshll.u32 %s1673_s8, 4  ;;  %s1674_s9 = smov [#allocation12]   ;;  %s372_s1 = int_to_ptr.vmem [resolvable:$true] %s371_s1 }
  0x1f   : > { %1264 = dma.hbm_to_vmem [thread:$0]  (!%p1785_p5), %s370_s12, 48, %s372_s1, [#allocation8]  }
  0x20   : > { %s343_s11 = sshll.u32 %s1937_s2, 4  ;;  %s399_s22 = sshll.u32 %s1674_s9, 4  ;;  %s344_s11 = int_to_ptr.hbm [resolvable:$true] %s343_s11  ;;  %s400_s22 = int_to_ptr.vmem [resolvable:$true] %s399_s22 }
  0x21   : > { %1258 = dma.hbm_to_vmem [thread:$0]  (!%p1785_p5), %s344_s11, 16, %s346_s26, [#allocation5]  }
  0x22   : > { %s411_s28 = sshll.u32 %s1923_s7, 4  ;;  %s1675_s11 = smov [#allocation13]   ;;  %s412_s28 = int_to_ptr.hbm [resolvable:$true] %s411_s28 }
  0x23   : > { %1270 = dma.hbm_to_vmem [thread:$0]  (!%p1785_p5), %s398_s3, 128, %s400_s22, [#allocation11]  }
  0x24   : > { %s413_s23 = sshll.u32 %s1675_s11, 4  ;;  %s40_s26 = sadd.s32 1, %s1661_s17  ;;  %s414_s23 = int_to_ptr.vmem [resolvable:$true] %s413_s23 }
  0x25   : > { %1273 = dma.hbm_to_vmem [thread:$0]  (!%p1785_p5), %s412_s28, 128, %s414_s23, [#allocation14]  }
  0x26   : > { %p42_p6 = scmp.ge.s32.totalorder %s40_s26, 2  ;;  %p56_p7 = scmp.ne.s32.totalorder %s1653_s15, %s1649_s14 }
  0x27   : > { %p57_p8 = scmp.eq.s32.totalorder %s1665_s18, 0  ;;  %s49_s29 = sadd.s32 1, %s1653_s15 }
  0x28   : > { %s1948_s26 = smov (%p42_p6, %s40_s26), 0  ;;  %p62_p9 = scmp.ne.s32.totalorder %s1649_s14, %s1645_s13 }
  0x29   : > { %s44_s12 = ssub.s32 %s1661_s17, %s1948_s26  ;;  %p1829_p10 = por %p57_p8, %p56_p7 }
  0x2a   : > { %p47_p11 = scmp.eq.s32.totalorder %s44_s12, 0  ;;  %p1835_p12 = por %p1766_p1, %p62_p9 }
  0x2b   : > { %s424_s21 = sand.u32 1, %s1653_s15   ;;  %s1087_s3 = sshll.u32 %s1661_s17, 3 }
  0x2c   : > { %s1842_s8 = scalar_select %p47_p11, %s1653_s15, %s49_s29  }
  0x2d   : > { %p1285_p13 = scmp.lt.s32.totalorder %s1665_s18, 2  ;;  %s1086_s1 = sshll.u32 %s424_s21, 3 }
  0x2e   : > { %s433_s22 = scalar_lea.hbm %s1916_s0, %s1087_s3  ;;  %s428_s27 = scalar_lea.vmem [#allocation2], %s1086_s1 }
  0x2f   : > { %s435_s25 = sshll.u32 %s433_s22, 4  ;;  %s437_s28 = sshll.u32 %s428_s27, 4  ;;  %s436_s25 = int_to_ptr.hbm [resolvable:$true] %s435_s25  ;;  %s438_s28 = int_to_ptr.vmem [resolvable:$true] %s437_s28 }
  0x30   : > { %p1275_p0 = pnand %p1285_p13, %p1829_p10  ;;  %s425_s11 = scalar_lea.sflag [#allocation3], %s424_s21 }
  0x31   : > { %446 = sbr.rel (%p1774_p3) target bundleno = 592 (0x250), region = 52  ;;  %s448_s23 = sand.u32 (!%p1774_p3), 1, %s1649_s14  }
  0x32   : > { %1277 = dma.hbm_to_vmem [thread:$0]  (!%p1275_p0), %s436_s25, 128, %s438_s28, %s425_s11  }
  0x33   : > { %s1089_s29 = sshll.u32 (!%p1774_p3), %s448_s23, 3  ;;  %s449_s12 = scalar_lea.sflag (!%p1774_p3), [#allocation3], %s448_s23 }
  0x34   : > { %s452_s2 = scalar_lea.vmem (!%p1774_p3), [#allocation2], %s1089_s29 }
  0x36   : > { %1624 = dma.done.wait (%p1835_p12), %s449_s12, 128  }
  0x37   : > { %1626 = vsyncadd (%p1835_p12), %s449_s12, 4294967168 }
  0x38   : > { %1628 = dma.done.wait (%p1766_p1), [#allocation5], 32  }
  0x39   : > { %1630 = vsyncadd (%p1766_p1), [#allocation5], 4294967264 }
  0x3a   : > { %1632 = dma.done.wait (%p1766_p1), [#allocation8], 3120  }
  0x3b   : > { %1634 = vsyncadd (%p1766_p1), [#allocation8], 4294964176 }
  0x3c   : > { %1636 = dma.done.wait (%p1766_p1), [#allocation11], 256  }
  0x3d   : > { %1638 = vsyncadd (%p1766_p1), [#allocation11], 4294967040 }
  0x3e   : > { %1640 = dma.done.wait (%p1766_p1), [#allocation14], 128  }
  0x3f   : > { %1642 = vsyncadd (%p1766_p1), [#allocation14], 4294967168  ;;  %v562_v0 = vld [vmem:[%s452_s2] sm:$0xff]  ;;  %v1676_v1 = vmov 128.0   ;;  %v1186_v2 = vld [vmem:[#allocation7 + $0xa8] sm:$0xf] }
  0x40   : > { %563 = vadd.xlane.f32.xlu0 %v562_v0  ;;  %1355 = vrcp.f32 %v1676_v1  ;;  %v1220_v3 = vld [vmem:[#allocation7 + $0xb0] sm:$0xf0]  ;;  %v1219_v4 = vld [vmem:[#allocation7 + $0xac] sm:$0xf]  ;;  %v1188_v6 = vld [vmem:[#allocation7 + $0xb4] sm:$0xf0] }
  0x41   : > { %v1187_v5 = vor.u32 %v1220_v3, %v1186_v2  ;;  %v1194_v7 = vld [vmem:[#allocation7 + $0xb0] sm:$0xf]  ;;  %v1221_v8 = vld [vmem:[#allocation7 + $0xb8] sm:$0xf0]  ;;  %v1191_v9 = vor.u32 %v1219_v4, %v1188_v6  ;;  %v1216_v23 = vld [vmem:[#allocation7 + $0x94] sm:$0xf] }
  0x42   : > { %v1195_v10 = vor.u32 %v1221_v8, %v1194_v7  ;;  %v1174_v21 = vld [vmem:[#allocation7 + $0x90] sm:$0xf]  ;;  %v1217_v22 = vld [vmem:[#allocation7 + $0x98] sm:$0xf0]  ;;  %v1176_v25 = vld [vmem:[#allocation7 + $0x9c] sm:$0xf0] }
  0x43   : > { %769 = vmatpush.bf16.msra.mxu0 %v1187_v5  ;;  %782 = vmatpush.bf16.msra.mxu1 %v1191_v9  ;;  %v1175_v24 = vor.u32 %v1217_v22, %v1174_v21  ;;  %v1182_v26 = vld [vmem:[#allocation7 + $0x98] sm:$0xf]  ;;  %v1218_v27 = vld [vmem:[#allocation7 + $0xa0] sm:$0xf0]  ;;  %v1179_v28 = vor.u32 %v1216_v23, %v1176_v25  ;;  %v1213_v32 = vld [vmem:[#allocation7 + $0x7c] sm:$0xf] }
  0x44   : > { %795 = vmatpush.bf16.msra.mxu2 %v1195_v10  ;;  %v1183_v29 = vor.u32 %v1218_v27, %v1182_v26  ;;  %v1162_v30 = vld [vmem:[#allocation7 + $0x78] sm:$0xf]  ;;  %v1214_v31 = vld [vmem:[#allocation7 + $0x80] sm:$0xf0]  ;;  %v1164_v34 = vld [vmem:[#allocation7 + $0x84] sm:$0xf0] }
  0x45   : > { %v1163_v33 = vor.u32 %v1214_v31, %v1162_v30  ;;  %v1170_v35 = vld [vmem:[#allocation7 + $0x80] sm:$0xf]  ;;  %v1215_v36 = vld [vmem:[#allocation7 + $0x88] sm:$0xf0]  ;;  %v1167_v37 = vor.u32 %v1213_v32, %v1164_v34  ;;  %v1210_v41 = vld [vmem:[#allocation7 + $0x64] sm:$0xf] }
  0x46   : > { %v1356_v11 = vpop.eup %1355  ;;  %v1171_v38 = vor.u32 %v1215_v36, %v1170_v35  ;;  %v1150_v39 = vld [vmem:[#allocation7 + $0x60] sm:$0xf]  ;;  %v1211_v40 = vld [vmem:[#allocation7 + $0x68] sm:$0xf0]  ;;  %v1152_v43 = vld [vmem:[#allocation7 + $0x6c] sm:$0xf0] }
  0x47   : > { %v566_v12 = vmul.f32 128.0, %v1356_v11  ;;  %vm570_vm0 = vweird.f32 %v1356_v11  ;;  %770 = vmatpush.bf16.msra.mxu0 %v1175_v24  ;;  %783 = vmatpush.bf16.msra.mxu1 %v1179_v28  ;;  %v1151_v42 = vor.u32 %v1211_v40, %v1150_v39  ;;  %v1158_v44 = vld [vmem:[#allocation7 + $0x68] sm:$0xf]  ;;  %v1212_v45 = vld [vmem:[#allocation7 + $0x70] sm:$0xf0]  ;;  %v1155_v46 = vor.u32 %v1210_v41, %v1152_v43  ;;  %p541_p1 = scmp.lt.s32.totalorder %s1657_s16, 1 }
  0x48   : > { %796 = vmatpush.bf16.msra.mxu2 %v1183_v29  ;;  %v1159_v47 = vor.u32 %v1212_v45, %v1158_v44  ;;  %v1138_v48 = vld [vmem:[#allocation7 + $0x48] sm:$0xf]  ;;  %v1208_v49 = vld [vmem:[#allocation7 + $0x50] sm:$0xf0]  ;;  %v1207_v50 = vld [vmem:[#allocation7 + $0x4c] sm:$0xf] }
  0x49   : > { %v567_v13 = vsub.f32 1.0, %v566_v12  ;;  %v1139_v51 = vor.u32 %v1208_v49, %v1138_v48  ;;  %v1140_v52 = vld [vmem:[#allocation7 + $0x54] sm:$0xf0]  ;;  %v1146_v53 = vld [vmem:[#allocation7 + $0x50] sm:$0xf]  ;;  %s1950_s16 = smov (!%p541_p1, %s1657_s16), 1 }
  0x4a   : > { %v1209_v54 = vld [vmem:[#allocation7 + $0x58] sm:$0xf0]  ;;  %v1143_v55 = vor.u32 %v1207_v50, %v1140_v52  ;;  %v1126_v57 = vld [vmem:[#allocation7 + $0x30] sm:$0xf]  ;;  %v1204_v59 = vld [vmem:[#allocation7 + $0x34] sm:$0xf] }
  0x4b   : > { %v568_v14 = vmul.f32 %v1356_v11, %v567_v13  ;;  %771 = vmatpush.bf16.msra.mxu0 %v1163_v33  ;;  %784 = vmatpush.bf16.msra.mxu1 %v1167_v37  ;;  %v1147_v56 = vor.u32 %v1209_v54, %v1146_v53  ;;  %v1205_v58 = vld [vmem:[#allocation7 + $0x38] sm:$0xf0]  ;;  %v1128_v61 = vld [vmem:[#allocation7 + $0x3c] sm:$0xf0]  ;;  %v1134_v62 = vld [vmem:[#allocation7 + $0x38] sm:$0xf] }
  0x4c   : > { %797 = vmatpush.bf16.msra.mxu2 %v1171_v38  ;;  %v1127_v60 = vor.u32 %v1205_v58, %v1126_v57  ;;  %v1206_v63 = vld [vmem:[#allocation7 + $0x40] sm:$0xf0]  ;;  %v1114_v2 = vld [vmem:[#allocation7 + $0x18] sm:$0xf]  ;;  %v1201_v4 = vld [vmem:[#allocation7 + $0x1c] sm:$0xf] }
  0x4d   : > { %v569_v15 = vadd.f32 %v1356_v11, %v568_v14  ;;  %v1135_v1 = vor.u32 %v1206_v63, %v1134_v62  ;;  %v1202_v3 = vld [vmem:[#allocation7 + $0x20] sm:$0xf0]  ;;  %v1116_v6 = vld [vmem:[#allocation7 + $0x24] sm:$0xf0]  ;;  %v1122_v7 = vld [vmem:[#allocation7 + $0x20] sm:$0xf] }
  0x4e   : > { %v1115_v5 = vor.u32 %v1202_v3, %v1114_v2  ;;  %v1203_v8 = vld [vmem:[#allocation7 + $0x28] sm:$0xf0]  ;;  %v1119_v9 = vor.u32 %v1201_v4, %v1116_v6  ;;  %v1198_v13 = vld [vmem:[#allocation7 + $0x4] sm:$0xf]  ;;  %v1353_v31 = vld [vmem:[#allocation4] ss:$0 sm:$0xff] }
  0x4f   : > { %v1873_v16 = vsel %vm570_vm0, %v1356_v11, %v569_v15  ;;  %772 = vmatpush.bf16.msra.mxu0 %v1151_v42  ;;  %785 = vmatpush.bf16.msra.mxu1 %v1155_v46  ;;  %v1123_v10 = vor.u32 %v1203_v8, %v1122_v7  ;;  %v1102_v11 = vld [vmem:[#allocation7] sm:$0xf]  ;;  %v1199_v12 = vld [vmem:[#allocation7 + $0x8] sm:$0xf0]  ;;  %v1104_v15 = vld [vmem:[#allocation7 + $0xc] sm:$0xf0] }
  0x50   : > { %798 = vmatpush.bf16.msra.mxu2 %v1159_v47  ;;  %v1103_v14 = vor.u32 %v1199_v12, %v1102_v11  ;;  %v1354_v34 = vld [vmem:[#allocation6] ss:$0 sm:$0xff]  ;;  %v633_v37 = vld [vmem:[#allocation9] sm:$0x7]  ;;  %s1677_s2 = smov 4   ;;  %s1884_s20 = sshll.u32 %s1950_s16, 2 }
  0x51   : > { %v635_v38 = vperm.slane %v633_v37, 0  ;;  %v636_v39 = vperm.slane %v633_v37, 1  ;;  %s561_s30 = scalar_lea.vmem %s1926_s10, %s1884_s20  ;;  %s1678_s21 = smov 124   ;;  %v808_v52 = vld [vmem:[#allocation10] sm:$0xff]  ;;  %v810_v54 = vld [vmem:[#allocation13] sm:$0xff] }
  0x52   : > { %s1940_s1 = sld [smem:[#allocation24_spill]] }
  0x53   : > { %773 = vmatpush.bf16.msra.mxu0 %v1139_v51  ;;  %786 = vmatpush.bf16.msra.mxu1 %v1143_v55  ;;  %v809_v51 = vld [vmem:[#allocation12] sm:$0xff]  ;;  %s1941_s25 = sld [smem:[#allocation23_spill]] }
  0x54   : > { %799 = vmatpush.bf16.msra.mxu2 %v1147_v56 }
  0x57   : > { %774 = vmatpush.bf16.msra.mxu0 %v1127_v60 }
  0x58   : > { %800 = vmatpush.bf16.msra.mxu2 %v1135_v1  ;;  %s554_s9 = scalar_lea.vmem %s1940_s1, %s1884_s20 }
  0x59   : > { %s547_s27 = scalar_lea.vmem %s1941_s25, %s1884_s20 }
  0x5b   : > { %775 = vmatpush.bf16.msra.mxu0 %v1115_v5 }
  0x5c   : > { %801 = vmatpush.bf16.msra.mxu2 %v1123_v10 }
  0x5f   : > { %776 = vmatpush.bf16.msra.mxu0 %v1103_v14 }
  0xb3   : > { %v564_v17 = vpop.xlane.xlu0 %563 }
  0xb4   : > { %v572_v18 = vmul.f32 %v1873_v16, %v564_v17  ;;  %v1110_v17 = vld [vmem:[#allocation7 + $0x8] sm:$0xf] }
  0xb6   : > { %v1876_v19 = vsub.f32 %v562_v0, %v572_v18  ;;  %v1131_v0 = vor.u32 %v1204_v59, %v1128_v61  ;;  %v1200_v18 = vld [vmem:[#allocation7 + $0x10] sm:$0xf0] }
  0xb7   : > { %v1111_v21 = vor.u32 %v1200_v18, %v1110_v17 }
  0xb8   : > { %v574_v20 = vmul.f32 %v1876_v19, %v1876_v19  ;;  %787 = vmatpush.bf16.msra.mxu1 %v1131_v0 }
  0xb9   : > { %802 = vmatpush.bf16.msra.mxu2 %v1111_v21 }
  0xba   : > { %575 = vadd.xlane.f32.xlu0 %v574_v20  ;;  %v1107_v20 = vor.u32 %v1198_v13, %v1104_v15 }
  0xbc   : > { %788 = vmatpush.bf16.msra.mxu1 %v1119_v9 }
  0xc0   : > { %789 = vmatpush.bf16.msra.mxu1 %v1107_v20 }
 0x12d   : > { %v576_v22 = vpop.xlane.xlu0 %575 }
 0x12e   : > { %v577_v23 = vmul.f32 %v576_v22, %v1873_v16 }
 0x130   : > { %v578_v24 = vadd.f32 1e-05, %v577_v23 }
 0x132   : > { %1357 = vrsqrt.f32 %v578_v24  ;;  %vm585_vm2 = vweird.f32 %v578_v24 }
 0x138   : > { %v1358_v25 = vpop.eup %1357 }
 0x139   : > { %v580_v26 = vmul.f32 %v1358_v25, %v578_v24  ;;  %vm586_vm1 = vweird.f32 %v1358_v25 }
 0x13a   : > { %vm587_vm3 = vmor %vm585_vm2, %vm586_vm1 }
 0x13b   : > { %v581_v27 = vmul.f32 %v1358_v25, %v580_v26 }
 0x13d   : > { %v582_v28 = vmul.f32 0.5, %v581_v27 }
 0x13f   : > { %v583_v29 = vsub.f32 1.5, %v582_v28 }
 0x141   : > { %v584_v30 = vmul.f32 %v1358_v25, %v583_v29 }
 0x143   : > { %v588_v32 = vsel %vm587_vm3, %v1358_v25, %v584_v30 }
 0x144   : > { %v589_v33 = vmul.f32 %v588_v32, %v1876_v19  ;;  %v637_v19 = vperm.slane %v633_v37, 2 }
 0x146   : > { %v594_v35 = vmul.f32 %v1353_v31, %v589_v33 }
 0x148   : > { %v599_v16 = vadd.f32 %v1354_v34, %v594_v35 }
 0x14a   : > { %v600_v36 = vpack.c.bf16 %v599_v16, %v599_v16 }
 0x14c   : > { %777 = vmatmul.bf16.vlgmr.msra.gmra.mxu0 %v600_v36  ;;  %790 = vmatmul.bf16.vlgmr.msra.gmra.mxu1 %v600_v36 }
 0x14d   : > { %803 = vmatmul.bf16.vlgmr.msra.gmra.mxu2 %v600_v36 }
 0x1c9   : > { %v778_v40 = vpop.f32.mrf.mxu0  ;;  %v791_v41 = vpop.f32.mrf.mxu1 }
 0x1ca   : > { %v779_v42 = vadd.f32 %v778_v40, %v635_v38  ;;  %v792_v43 = vadd.f32 %v791_v41, %v636_v39 }
 0x1cc   : > { %824 = vrot.lane.b32.xlu2 %v792_v43, %s1677_s2  ;;  %812 = vrot.lane.b32.xlu1 %v779_v42, %s1677_s2  ;;  %v823_v55 = vmul.f32 %v808_v52, %v792_v43  ;;  %v811_v63 = vmul.f32 %v808_v52, %v779_v42 }
 0x1d0   : > { %v804_v44 = vpop.f32.mrf.mxu2 }
 0x1d1   : > { %v805_v45 = vadd.f32 %v804_v44, %v637_v19  ;;  %v780_v46 = vpop.f32.mrf.mxu0  ;;  %v793_v47 = vpop.f32.mrf.mxu1 }
 0x1d3   : > { %v834_v48 = vpack.c.bf16 %v805_v45, %v805_v45 }
 0x1d4   : > { %828 = vrot.lane.b32.xlu2 %v792_v43, %s1678_s21  ;;  %816 = vrot.lane.b32.xlu1 %v779_v42, %s1678_s21 }
 0x1d5   : > { %835 = vst [vmem:[%s561_s30] sm:$0xf] %v834_v48 }
 0x1d8   : > { %v806_v49 = vpop.f32.mrf.mxu2 }
 0x226   : > { %v825_v50 = vpop.permute.xlu2 %824 }
 0x227   : > { %v826_v53 = vmul.f32 %v825_v50, %v809_v51 }
 0x229   : > { %v827_v57 = vadd.f32 %v826_v53, %v823_v55 }
 0x22e   : > { %v829_v56 = vpop.permute.xlu2 %828 }
 0x22f   : > { %v830_v58 = vmul.f32 %v829_v56, %v810_v54 }
 0x231   : > { %v831_v59 = vadd.f32 %v830_v58, %v827_v57 }
 0x233   : > { %v832_v60 = vpack.c.bf16 %v831_v59, %v831_v59 }
 0x235   : > { %833 = vst [vmem:[%s554_s9] sm:$0xf] %v832_v60 }
 0x23e   : > { %v813_v61 = vpop.permute.xlu1 %812 }
 0x23f   : > { %v814_v62 = vmul.f32 %v813_v61, %v809_v51 }
 0x241   : > { %v815_v1 = vadd.f32 %v814_v62, %v811_v63 }
 0x246   : > { %v817_v0 = vpop.permute.xlu1 %816 }
 0x247   : > { %v818_v2 = vmul.f32 %v817_v0, %v810_v54 }
 0x249   : > { %v819_v3 = vadd.f32 %v818_v2, %v815_v1 }
 0x24b   : > { %v820_v4 = vmul.f32 0.17677669, %v819_v3 }
 0x24d   : > { %v821_v5 = vpack.c.bf16 %v820_v4, %v820_v4 }
 0x24f   : > { %822 = vst [vmem:[%s547_s27] sm:$0xf] %v821_v5 }
 0x250 PF: > { %s28_s18 = sadd.s32 1, %s1665_s18   ;;  %s1942_s13 = smov %s1649_s14 }
 0x251   : > { %p25_p2 = scmp.ge.s32.totalorder %s28_s18, 4   ;;  %s1943_s14 = smov %s1653_s15 }
 0x252   : > { %s1944_s15 = smov %s1842_s8  ;;  %s1945_s16 = smov %s1661_s17 }
 0x253   : > { %s1946_s17 = smov %s1948_s26  ;;  %27 = sbr.rel (!%p25_p2) target bundleno = 14 (0xe), region = 147 }
 0x258   :  { %901 = vsyncpa [#allocation3], 1 }
 0x259   :  { %903 = vsyncpa [#allocation3 + $0x1], 1 }
 0x25a   :  { %904 = vsyncpa [#allocation5], 1 }
 0x25b   :  { %905 = vsyncpa [#allocation8], 1 }
 0x25c   :  { %906 = vsyncpa [#allocation11], 1 }
 0x25d   :  { %907 = vsyncpa [#allocation14], 1 }

// kernel: gpt_neox_layer_forward.5
= control target key start
LH: loop header
LB: loop body
LE: loop exit
PB: predicated region body
PF: predicated region fallthrough
CT: control target
= control target key end

     0   :  { %s2310_s0 = inlined_call_operand.vmem [shape: f32[16,128], index: 0, kind: input, shape index: {}]   ;;  %s2311_s1 = inlined_call_operand.vmem [shape: bf16[16,128], index: 1, kind: input, shape index: {}]   ;;  %s2312_s2 = inlined_call_operand.vmem [shape: f32[1,128], index: 2, kind: input, shape index: {}]   ;;  %s2313_s3 = inlined_call_operand.hbm [shape: f32[1,128], index: 3, kind: input, shape index: {}]   ;;  %s2314_s4 = inlined_call_operand.hbm [shape: bf16[128,128], index: 4, kind: input, shape index: {}]   ;;  %s2315_s5 = inlined_call_operand.hbm [shape: f32[1,128], index: 5, kind: input, shape index: {}]   ;;  %s2316_s6 = inlined_call_operand.hbm [shape: bf16[128,512], index: 6, kind: input, shape index: {}]   ;;  %s2317_s7 = inlined_call_operand.vmem [shape: f32[1,512], index: 7, kind: input, shape index: {}]   ;;  %s2318_s8 = inlined_call_operand.hbm [shape: bf16[512,128], index: 8, kind: input, shape index: {}]   ;;  %s2319_s9 = inlined_call_operand.hbm [shape: f32[1,128], index: 9, kind: input, shape index: {}]   ;;  %s2320_s10 = inlined_call_operand.hbm [shape: f32[16,128], index: 10, kind: output, shape index: {}]  }
   0x1   :  { %2335 = sst [smem:[#allocation32_spill]] %s2310_s0 }
   0x2   :  { %2336 = sst [smem:[#allocation33_spill]] %s2311_s1 }
   0x3   :  { %2337 = sst [smem:[#allocation34_spill]] %s2312_s2 }
   0x4   :  { %2338 = sst [smem:[#allocation35_spill]] %s2314_s4 }
   0x5   :  { %2339 = sst [smem:[#allocation36_spill]] %s2316_s6 }
   0x6   :  { %2340 = sst [smem:[#allocation37_spill]] %s2317_s7 }
   0x7   :  { %2341 = sst [smem:[#allocation38_spill]] %s2320_s10 }
   0x8   :  { %15 = vsyncpa [#allocation6], 0 }
   0x9   :  { %16 = vsyncpa [#allocation9], 0 }
   0xa   :  { %17 = vsyncpa [#allocation12], 0 }
   0xb   :  { %19 = vsyncpa [#allocation12 + $0x1], 0 }
   0xc   :  { %20 = vsyncpa [#allocation15], 0 }
   0xd   :  { %21 = vsyncpa [#allocation7], 0 }
   0xe   :  { %23 = vsyncpa [#allocation7 + $0x1], 0  ;;  %s1969_s13 = smov 0   ;;  %s1971_s14 = smov 0  }
   0xf   :  { %s1973_s15 = smov 0   ;;  %s1975_s16 = smov 0  }
  0x10   :  { %s1977_s17 = smov 0   ;;  %s1979_s18 = smov 0  }
  0x11   :  { %s1981_s19 = smov 0   ;;  %s1983_s20 = smov 0  }
  0x12   :  { %s1985_s21 = smov 0   ;;  %s1987_s22 = smov 0  }
  0x13   :  { %s1989_s23 = smov 0  }
  0x14 LB: > { %2342 = sst [smem:[#allocation22_spill]] %s1861_s13  ;;  %s2023_s24 = sadd.s32 4294967295, %s1901_s23   ;;  %s1901_s23 = sphi %s1989_s23, %s29_s23   ;;  %s1897_s22 = sphi %s1987_s22, %s2382_s22   ;;  %s1893_s21 = sphi %s1985_s21, %s2389_s21   ;;  %s1889_s20 = sphi %s1983_s20, %s2380_s20   ;;  %s1885_s19 = sphi %s1981_s19, %s2388_s19   ;;  %s1881_s18 = sphi %s1979_s18, %s2379_s18   ;;  %s1877_s17 = sphi %s1977_s17, %s2387_s17   ;;  %s1873_s16 = sphi %s1975_s16, %s2386_s16   ;;  %s1869_s15 = sphi %s1973_s15, %s2385_s15   ;;  %s1865_s14 = sphi %s1971_s14, %s2384_s14   ;;  %s1861_s13 = sphi %s1969_s13, %s2383_s13  }
  0x15   : > { %2343 = sst [smem:[#allocation23_spill]] %s1881_s18  ;;  %s1188_s25 = sadd.s32 4294967294, %s1901_s23  }
  0x16   : > { %2344 = sst [smem:[#allocation24_spill]] %s1885_s19  ;;  %p197_p0 = scmp.ne.s32.totalorder %s1877_s17, %s1873_s16 }
  0x17   : > { %2345 = sst [smem:[#allocation25_spill]] %s1889_s20  ;;  %p198_p1 = scmp.eq.s32.totalorder %s2023_s24, 0 }
  0x18   : > { %2346 = sst [smem:[#allocation26_spill]] %s1897_s22  ;;  %p293_p2 = scmp.ne.s32.totalorder %s1869_s15, %s1865_s14 }
  0x19   : > { %p2033_p3 = por %p198_p1, %p197_p0  ;;  %p294_p4 = scmp.eq.s32.totalorder %s2023_s24, 3 }
  0x1a   : > { %p299_p5 = scmp.ne.s32.totalorder %s1865_s14, %s1861_s13  ;;  %p300_p6 = scmp.eq.s32.totalorder %s1188_s25, 3 }
  0x1b   : > { %p2040_p7 = por %p294_p4, %p293_p2  ;;  %p1189_p8 = scmp.ge.s32.totalorder %s1901_s23, 1 }
  0x1c   : > { %p2045_p9 = por %p300_p6, %p299_p5  ;;  %p307_p10 = scmp.lt.s32.totalorder %s1901_s23, 5 }
  0x1d   : > { %s2348_s28 = scalar_select %p2040_p7, 1, 0 }
  0x1e   : > { %s2350_s29 = scalar_select %p2045_p9, 1, 0 }
  0x1f   : > { %2349 = sst [smem:[#allocation27_spill]] %s2348_s28  ;;  %p2053_p11 = pnand %p1189_p8, %p307_p10 }
  0x20   : > { %2351 = sst [smem:[#allocation28_spill]] %s2350_s29  ;;  %s1903_s25 = smov [#allocation8]  }
  0x21   : > { %s2352_s4 = sld [smem:[#allocation35_spill]]  ;;  %p1442_p12 = pneg %p2053_p11 }
  0x22   : > { %s335_s26 = sshll.u32 %s1903_s25, 4  ;;  %s2324_s11 = smov 64   ;;  %s336_s26 = int_to_ptr.vmem [resolvable:$true] %s335_s26 }
  0x23   : > { %p2061_p13 = pnand %p1442_p12, %p198_p1  ;;  %s38_s29 = sadd.s32 1, %s1893_s21 }
  0x24   : > { %p39_p0 = scmp.ge.s32.totalorder %s38_s29, 2  ;;  %s41_s25 = sadd.s32 1, %s1897_s22 }
  0x25   : > { %s184_s13 = sadd.s32 1, %s1881_s18  ;;  %p191_p2 = scmp.ne.s32.totalorder %s1881_s18, %s1877_s17 }
  0x26   : > { %s2391_s29 = smov (%p39_p0, %s38_s29), 0  ;;  %s2393_s25 = smov (!%p39_p0, %s41_s25), %s1897_s22 }
  0x27   : > { %s333_s12 = sshll.u32 %s2352_s4, 4  ;;  %s2325_s4 = smov 4   ;;  %s334_s12 = int_to_ptr.hbm [resolvable:$true] %s333_s12 }
  0x28   : > { %1448 = dma.hbm_to_vmem [thread:$0]  (!%p2061_p13), %s334_s12, 1024, %s336_s26, [#allocation9], %s2324_s11, %s2324_s11, %s2325_s4  }
  0x29   : > { %2355 = sst [smem:[#allocation29_spill]] %s2391_s29  ;;  %s181_s10 = ssub.s32 %s1893_s21, %s2391_s29 }
  0x2a   : > { %p192_p4 = scmp.eq.s32.totalorder %s1901_s23, 0  ;;  %p43_p5 = scmp.ge.s32.totalorder %s2393_s25, 2 }
  0x2b   : > { %p182_p6 = scmp.eq.s32.totalorder %s181_s10, 0  ;;  %p1470_p10 = scmp.lt.s32.totalorder %s1901_s23, 4 }
  0x2c   : > { %p2081_p8 = por %p192_p4, %p191_p2  ;;  %s2395_s25 = smov (%p43_p5, %s2393_s25), 0 }
  0x2d   : > { %2357 = sst [smem:[#allocation30_spill]] %s2395_s25  ;;  %s280_s11 = ssub.s32 %s1897_s22, %s2395_s25 }
  0x2e   : > { %s2089_s12 = scalar_select %p182_p6, %s1881_s18, %s184_s13  }
  0x2f   : > { %s387_s4 = sand.u32 1, %s1901_s23   ;;  %p281_p12 = scmp.eq.s32.totalorder %s280_s11, 0 }
  0x30   : > { %2358 = sst [smem:[#allocation31_spill]] %s2089_s12  ;;  %s389_s28 = sand.u32 1, %s1881_s18  }
  0x31   : > { %s1378_s29 = sshll.u32 %s1893_s21, 3  ;;  %s2359_s2 = sadd.s32 1, %s1869_s15 }
  0x32   : > { %s2099_s7 = scalar_select %p281_p12, %s1869_s15, %s2359_s2  }
  0x33   : > { %s2101_s10 = sshll.u32 %s389_s28, 7  ;;  %s2360_s6 = sld [smem:[#allocation36_spill]] }
  0x34   : > { %s391_s13 = scalar_lea.vmem [#allocation11], %s2101_s10  ;;  %p2111_p0 = pnand %p1470_p10, %p2081_p8 }
  0x35   : > { %s399_s12 = sshll.u32 %s391_s13, 4  ;;  %s2115_s2 = scalar_lea.sflag [#allocation12], %s387_s4  ;;  %s400_s12 = int_to_ptr.vmem [resolvable:$true] %s399_s12 }
  0x36   : > { %s1906_s28 = smov 256   ;;  %s1907_s0 = smov 128  }
  0x37   : > { %s1908_s1 = smov 8   ;;  %s322_s13 = sshll.u32 %s2313_s3, 4  ;;  %s323_s13 = int_to_ptr.hbm [resolvable:$true] %s322_s13 }
  0x38   : > { %s1909_s26 = smov [#allocation5]   ;;  %s348_s22 = sshll.u32 %s2315_s5, 4  ;;  %s349_s22 = int_to_ptr.hbm [resolvable:$true] %s348_s22 }
  0x39   : > { %s396_s19 = scalar_lea.hbm %s2360_s6, %s1378_s29  ;;  %s324_s6 = sshll.u32 %s1909_s26, 4  ;;  %s325_s6 = int_to_ptr.vmem [resolvable:$true] %s324_s6 }
  0x3a   : > { %s397_s20 = sshll.u32 %s396_s19, 4  ;;  %s1910_s18 = smov [#allocation10]   ;;  %s398_s20 = int_to_ptr.hbm [resolvable:$true] %s397_s20 }
  0x3b   : > { %1458 = dma.hbm_to_vmem [thread:$0]  (!%p2111_p0), %s398_s20, 2048, %s400_s12, %s2115_s2, %s1906_s28, %s1907_s0, %s1908_s1  }
  0x3c   : > { %1445 = dma.hbm_to_vmem [thread:$0]  (!%p2061_p13), %s323_s13, 16, %s325_s6, [#allocation6]  }
  0x3d   : > { %s350_s20 = sshll.u32 %s1910_s18, 4  ;;  %s360_s0 = sshll.u32 %s2319_s9, 4  ;;  %s351_s20 = int_to_ptr.vmem [resolvable:$true] %s350_s20  ;;  %s361_s0 = int_to_ptr.hbm [resolvable:$true] %s360_s0 }
  0x3e   : > { %1451 = dma.hbm_to_vmem [thread:$0]  (!%p2061_p13), %s349_s22, 16, %s351_s20, [#allocation9]  }
  0x3f   : > { %s1911_s1 = smov [#allocation14]   ;;  %s1379_s25 = sshll.u32 %s1893_s21, 7 }
  0x40   : > { %s362_s19 = sshll.u32 %s1911_s1, 4  ;;  %s426_s6 = scalar_lea.hbm %s2318_s8, %s1379_s25  ;;  %s363_s19 = int_to_ptr.vmem [resolvable:$true] %s362_s19 }
  0x41   : > { %1454 = dma.hbm_to_vmem [thread:$0]  (!%p2061_p13), %s361_s0, 16, %s363_s19, [#allocation15]  }
  0x42   : > { %s427_s18 = sshll.u32 %s426_s6, 4  ;;  %s421_s13 = scalar_lea.vmem [#allocation13], %s2101_s10  ;;  %s428_s18 = int_to_ptr.hbm [resolvable:$true] %s427_s18 }
  0x43   : > { %s429_s4 = sshll.u32 %s421_s13, 4  ;;  %s2362_s12 = smov 4   ;;  %s430_s4 = int_to_ptr.vmem [resolvable:$true] %s429_s4 }
  0x44   : > { %s2363_s28 = smov 64   ;;  %441 = sbr.rel (%p2053_p11) target bundleno = 725 (0x2d5), region = 60 }
  0x45   : > { %1461 = dma.hbm_to_vmem [thread:$0]  (!%p2111_p0), %s428_s18, 2048, %s430_s4, %s2115_s2, %s2363_s28, %s2363_s28, %s2362_s12  }
  0x49   : > { %1840 = dma.done.wait (%p198_p1), [#allocation6], 16  }
  0x4a   : > { %1842 = vsyncadd (%p198_p1), [#allocation6], 4294967280 }
  0x4b   : > { %1844 = dma.done.wait (%p198_p1), [#allocation9], 1040  }
  0x4c   : > { %1846 = vsyncadd (%p198_p1), [#allocation9], 4294966256  ;;  %s458_s22 = sand.u32 1, %s2023_s24   ;;  %s460_s30 = sand.u32 1, %s1877_s17  }
  0x4d   : > { %s1205_s10 = sshll.u32 %s460_s30, 7  ;;  %s459_s16 = scalar_lea.sflag [#allocation12], %s458_s22 }
  0x4e   : > { %s2158_s11 = scalar_lea.vmem [#allocation11], %s1205_s10 }
  0x4f   : > { %1848 = dma.done.wait (%p2033_p3), %s459_s16, 4096  }
  0x50   : > { %1850 = vsyncadd (%p2033_p3), %s459_s16, 4294963200  ;;  %s2164_s2 = scalar_lea.vmem [#allocation13], %s1205_s10 }
  0x51   : > { %1852 = dma.done.wait (%p198_p1), [#allocation15], 16  }
  0x52   : > { %1854 = vsyncadd (%p198_p1), [#allocation15], 4294967280  ;;  %s2364_s20 = sld [smem:[#allocation25_spill]]  ;;  %s2334_s1 = sand.u32 1, %s1865_s14  }
  0x53   : > { %s2365_s0 = sld [smem:[#allocation24_spill]]  ;;  %s2174_s19 = sshll.u32 %s2334_s1, 3 }
  0x54   : > { %s2366_s6 = sld [smem:[#allocation32_spill]]  ;;  %s531_s1 = scalar_lea.vmem [#allocation16], %s2174_s19 }
  0x55   : > { %s2367_s12 = sld [smem:[#allocation33_spill]] }
  0x56   : > { %s2368_s10 = sld [smem:[#allocation37_spill]] }
  0x58   : > { %p532_p11 = scmp.lt.s32.totalorder %s2364_s20, 1 }
  0x59   : > { %s1211_s27 = sshll.u32 %s2365_s0, 1  ;;  %p1212_p1 = scmp.ne.s32.totalorder %s2365_s0, 0 }
  0x5a   : > { %p542_p3 = scmp.lt.s32.totalorder %s1211_s27, 3  ;;  %s2397_s20 = smov (!%p532_p11, %s2364_s20), 1 }
  0x5b   : > { %s1209_s25 = sshll.u32 %s2397_s20, 3  ;;  %s1210_s24 = sshll.u32 %s2397_s20, 2 }
  0x5c   : > { %s2399_s27 = smov (!%p542_p3, %s1211_s27), 3  ;;  %s2183_s18 = scalar_lea.vmem %s2366_s6, %s1209_s25 }
  0x5d   : > { %s539_s28 = scalar_lea.vmem %s2367_s12, %s1210_s24  ;;  %s544_s16 = scalar_lea.vmem %s2368_s10, %s2399_s27 }
  0x5e   : > { %550 = sbr.rel (%p1212_p1) target bundleno = 369 (0x171), region = 88  ;;  %s2369_s25 = sld [smem:[#allocation34_spill]] (!%p1212_p1) }
  0x63   : > { %v551_v0 = vld [vmem:[%s2183_s18] sm:$0xff]  ;;  %v1387_v1 = vld [vmem:[#allocation8 + $0x38] sm:$0xff]  ;;  %v1384_v4 = vld [vmem:[#allocation8 + $0x20] sm:$0xff]  ;;  %v1912_v8 = vmov 128.0   ;;  %v1913_v25 = vmov 0.0  }
  0x64   : > { %552 = vadd.xlane.f32.xlu0 %v551_v0  ;;  %v1386_v2 = vld [vmem:[#allocation8 + $0x30] sm:$0xff]  ;;  %660 = vmatpush.bf16.msra.mxu0 %v1387_v1  ;;  %v1385_v3 = vld [vmem:[#allocation8 + $0x28] sm:$0xff]  ;;  %v1383_v5 = vld [vmem:[#allocation8 + $0x18] sm:$0xff]  ;;  %1578 = vrcp.f32 %v1912_v8  ;;  %674 = vst [vmem:[#allocation4] sm:$0xff] %v1913_v25 }
  0x65   : > { %v1382_v6 = vld [vmem:[#allocation8 + $0x10] sm:$0xff]  ;;  %v1381_v7 = vld [vmem:[#allocation8 + $0x8] sm:$0xff]  ;;  %v1380_v9 = vld [vmem:[#allocation8] sm:$0xff] }
  0x66   : > { %v591_v10 = vld [vmem:[%s539_s28] sm:$0xf]  ;;  %v1577_v22 = vld [vmem:[#allocation10] ss:$0 sm:$0xff]  ;;  %v1576_v37 = vld [vmem:[#allocation5] ss:$0 sm:$0xff] }
  0x67   : > { %v1575_v35 = vld [vmem:[%s2369_s25] ss:$0 sm:$0xff] }
  0x68   : > { %661 = vmatpush.bf16.msra.mxu0 %v1386_v2 }
  0x6a   : > { %v1579_v11 = vpop.eup %1578 }
  0x6b   : > { %v555_v12 = vmul.f32 128.0, %v1579_v11  ;;  %vm559_vm0 = vweird.f32 %v1579_v11 }
  0x6c   : > { %662 = vmatpush.bf16.msra.mxu0 %v1385_v3 }
  0x6d   : > { %v556_v13 = vsub.f32 1.0, %v555_v12 }
  0x6f   : > { %v557_v14 = vmul.f32 %v1579_v11, %v556_v13 }
  0x70   : > { %663 = vmatpush.bf16.msra.mxu0 %v1384_v4 }
  0x71   : > { %v558_v15 = vadd.f32 %v1579_v11, %v557_v14 }
  0x73   : > { %v560_v16 = vsel %vm559_vm0, %v1579_v11, %v558_v15 }
  0x74   : > { %664 = vmatpush.bf16.msra.mxu0 %v1383_v5 }
  0x78   : > { %665 = vmatpush.bf16.msra.mxu0 %v1382_v6 }
  0x7c   : > { %666 = vmatpush.bf16.msra.mxu0 %v1381_v7 }
  0x80   : > { %667 = vmatpush.bf16.msra.mxu0 %v1380_v9 }
  0x83   : > { %668 = vmatmul.bf16.vlgmr.msra.gmra.mxu0 %v591_v10 }
  0xd7   : > { %v553_v17 = vpop.xlane.xlu0 %552 }
  0xd8   : > { %v561_v18 = vmul.f32 %v560_v16, %v553_v17 }
  0xda   : > { %v562_v19 = vsub.f32 %v551_v0, %v561_v18 }
  0xdc   : > { %v563_v20 = vmul.f32 %v562_v19, %v562_v19 }
  0xde   : > { %564 = vadd.xlane.f32.xlu0 %v563_v20 }
 0x100   : > { %v669_v21 = vpop.f32.mrf.mxu0 }
 0x101   : > { %v670_v24 = vadd.f32 %v1577_v22, %v669_v21 }
 0x103   : > { %673 = vst [vmem:[#allocation2] sm:$0xff] %v670_v24 }
 0x108   : > { %v671_v23 = vpop.f32.mrf.mxu0 }
 0x151   : > { %v565_v26 = vpop.xlane.xlu0 %564 }
 0x152   : > { %v566_v27 = vmul.f32 %v565_v26, %v560_v16 }
 0x154   : > { %v567_v28 = vadd.f32 1e-05, %v566_v27 }
 0x156   : > { %1580 = vrsqrt.f32 %v567_v28  ;;  %vm574_vm2 = vweird.f32 %v567_v28 }
 0x15c   : > { %v1581_v29 = vpop.eup %1580 }
 0x15d   : > { %v569_v30 = vmul.f32 %v1581_v29, %v567_v28  ;;  %vm575_vm1 = vweird.f32 %v1581_v29 }
 0x15e   : > { %vm576_vm3 = vmor %vm574_vm2, %vm575_vm1 }
 0x15f   : > { %v570_v31 = vmul.f32 %v1581_v29, %v569_v30 }
 0x161   : > { %v571_v32 = vmul.f32 0.5, %v570_v31 }
 0x163   : > { %v572_v33 = vsub.f32 1.5, %v571_v32 }
 0x165   : > { %v573_v34 = vmul.f32 %v1581_v29, %v572_v33 }
 0x167   : > { %v577_v36 = vsel %vm576_vm3, %v1581_v29, %v573_v34 }
 0x168   : > { %v578_v38 = vmul.f32 %v577_v36, %v562_v19 }
 0x16a   : > { %v583_v39 = vmul.f32 %v1575_v35, %v578_v38 }
 0x16c   : > { %v588_v40 = vadd.f32 %v1576_v37, %v583_v39 }
 0x16e   : > { %v589_v41 = vpack.c.bf16 %v588_v40, %v588_v40 }
 0x170   : > { %590 = vst [vmem:[#allocation3] sm:$0xf] %v589_v41 }
 0x171 PF: > { %v1303_v42 = vld [vmem:[%s2158_s11 + $0x70] sm:$0xf]  ;;  %v1403_v43 = vld [vmem:[%s2158_s11 + $0x74] sm:$0xf0]  ;;  %v1402_v44 = vld [vmem:[%s2158_s11 + $0x74] sm:$0xf] }
 0x172   : > { %v1304_v45 = vor.u32 %v1403_v43, %v1303_v42  ;;  %v1305_v46 = vld [vmem:[%s2158_s11 + $0x78] sm:$0xf0]  ;;  %v1295_v47 = vld [vmem:[%s2158_s11 + $0x60] sm:$0xf]  ;;  %v1401_v48 = vld [vmem:[%s2158_s11 + $0x64] sm:$0xf0] }
 0x173   : > { %v1308_v49 = vor.u32 %v1402_v44, %v1305_v46  ;;  %v1400_v50 = vld [vmem:[%s2158_s11 + $0x64] sm:$0xf]  ;;  %v1297_v51 = vld [vmem:[%s2158_s11 + $0x68] sm:$0xf0]  ;;  %v1296_v52 = vor.u32 %v1401_v48, %v1295_v47  ;;  %v1287_v54 = vld [vmem:[%s2158_s11 + $0x50] sm:$0xf] }
 0x174   : > { %778 = vmatpush.bf16.msra.mxu0 %v1304_v45  ;;  %v1300_v53 = vor.u32 %v1400_v50, %v1297_v51  ;;  %v1399_v55 = vld [vmem:[%s2158_s11 + $0x54] sm:$0xf0]  ;;  %v1398_v56 = vld [vmem:[%s2158_s11 + $0x54] sm:$0xf]  ;;  %v1289_v57 = vld [vmem:[%s2158_s11 + $0x58] sm:$0xf0] }
 0x175   : > { %791 = vmatpush.bf16.msra.mxu1 %v1308_v49  ;;  %v1288_v58 = vor.u32 %v1399_v55, %v1287_v54  ;;  %v1292_v59 = vor.u32 %v1398_v56, %v1289_v57  ;;  %v1279_v60 = vld [vmem:[%s2158_s11 + $0x40] sm:$0xf]  ;;  %v1397_v61 = vld [vmem:[%s2158_s11 + $0x44] sm:$0xf0]  ;;  %v1396_v62 = vld [vmem:[%s2158_s11 + $0x44] sm:$0xf] }
 0x176   : > { %v1281_v63 = vld [vmem:[%s2158_s11 + $0x48] sm:$0xf0]  ;;  %v1280_v0 = vor.u32 %v1397_v61, %v1279_v60  ;;  %v1411_v1 = vld [vmem:[%s2164_s2 + $0x38] sm:$0xff]  ;;  %v1271_v4 = vld [vmem:[%s2158_s11 + $0x30] sm:$0xf] }
 0x177   : > { %v1419_v2 = vld [vmem:[%s2164_s2 + $0x78] sm:$0xff]  ;;  %v1284_v3 = vor.u32 %v1396_v62, %v1281_v63  ;;  %v1394_v6 = vld [vmem:[%s2158_s11 + $0x34] sm:$0xf]  ;;  %953 = vmatpush.bf16.msra.mxu2 %v1411_v1  ;;  %v1263_v12 = vld [vmem:[%s2158_s11 + $0x20] sm:$0xf] }
 0x178   : > { %779 = vmatpush.bf16.msra.mxu0 %v1296_v52  ;;  %v1395_v5 = vld [vmem:[%s2158_s11 + $0x34] sm:$0xf0]  ;;  %v1273_v7 = vld [vmem:[%s2158_s11 + $0x38] sm:$0xf0]  ;;  %966 = vmatpush.bf16.msra.mxu3 %v1419_v2  ;;  %v1410_v8 = vld [vmem:[%s2164_s2 + $0x30] sm:$0xff] }
 0x179   : > { %792 = vmatpush.bf16.msra.mxu1 %v1300_v53  ;;  %v1418_v9 = vld [vmem:[%s2164_s2 + $0x70] sm:$0xff]  ;;  %v1272_v10 = vor.u32 %v1395_v5, %v1271_v4  ;;  %v1276_v11 = vor.u32 %v1394_v6, %v1273_v7  ;;  %v1393_v13 = vld [vmem:[%s2158_s11 + $0x24] sm:$0xf0]  ;;  %v1392_v14 = vld [vmem:[%s2158_s11 + $0x24] sm:$0xf] }
 0x17a   : > { %v1265_v15 = vld [vmem:[%s2158_s11 + $0x28] sm:$0xf0]  ;;  %v1264_v16 = vor.u32 %v1393_v13, %v1263_v12  ;;  %v1255_v18 = vld [vmem:[%s2158_s11 + $0x10] sm:$0xf]  ;;  %v1391_v19 = vld [vmem:[%s2158_s11 + $0x14] sm:$0xf0] }
 0x17b   : > { %954 = vmatpush.bf16.msra.mxu2 %v1410_v8  ;;  %v1268_v17 = vor.u32 %v1392_v14, %v1265_v15  ;;  %v1390_v20 = vld [vmem:[%s2158_s11 + $0x14] sm:$0xf]  ;;  %v1257_v21 = vld [vmem:[%s2158_s11 + $0x18] sm:$0xf0]  ;;  %v1256_v22 = vor.u32 %v1391_v19, %v1255_v18  ;;  %v1247_v24 = vld [vmem:[%s2158_s11] sm:$0xf] }
 0x17c   : > { %780 = vmatpush.bf16.msra.mxu0 %v1288_v58  ;;  %967 = vmatpush.bf16.msra.mxu3 %v1418_v9  ;;  %v1260_v23 = vor.u32 %v1390_v20, %v1257_v21  ;;  %v1389_v25 = vld [vmem:[%s2158_s11 + $0x4] sm:$0xf0]  ;;  %v1388_v26 = vld [vmem:[%s2158_s11 + $0x4] sm:$0xf]  ;;  %v1249_v27 = vld [vmem:[%s2158_s11 + $0x8] sm:$0xf0] }
 0x17d   : > { %793 = vmatpush.bf16.msra.mxu1 %v1292_v59  ;;  %v1248_v28 = vor.u32 %v1389_v25, %v1247_v24  ;;  %v1252_v29 = vor.u32 %v1388_v26, %v1249_v27  ;;  %v675_v30 = vld [vmem:[#allocation3] sm:$0xf]  ;;  %v1409_v31 = vld [vmem:[%s2164_s2 + $0x28] sm:$0xff]  ;;  %v1408_v33 = vld [vmem:[%s2164_s2 + $0x20] sm:$0xff] }
 0x17e   : > { %v1417_v32 = vld [vmem:[%s2164_s2 + $0x68] sm:$0xff]  ;;  %v1416_v34 = vld [vmem:[%s2164_s2 + $0x60] sm:$0xff]  ;;  %v1407_v35 = vld [vmem:[%s2164_s2 + $0x18] sm:$0xff] }
 0x17f   : > { %955 = vmatpush.bf16.msra.mxu2 %v1409_v31  ;;  %v1415_v36 = vld [vmem:[%s2164_s2 + $0x58] sm:$0xff]  ;;  %v1406_v37 = vld [vmem:[%s2164_s2 + $0x10] sm:$0xff]  ;;  %v1405_v39 = vld [vmem:[%s2164_s2 + $0x8] sm:$0xff] }
 0x180   : > { %781 = vmatpush.bf16.msra.mxu0 %v1280_v0  ;;  %968 = vmatpush.bf16.msra.mxu3 %v1417_v32  ;;  %v1414_v38 = vld [vmem:[%s2164_s2 + $0x50] sm:$0xff]  ;;  %v1413_v40 = vld [vmem:[%s2164_s2 + $0x48] sm:$0xff]  ;;  %v1404_v41 = vld [vmem:[%s2164_s2] sm:$0xff] }
 0x181   : > { %794 = vmatpush.bf16.msra.mxu1 %v1284_v3  ;;  %v1412_v42 = vld [vmem:[%s2164_s2 + $0x40] sm:$0xff]  ;;  %v692_v43 = vld [vmem:[%s544_s16] sm:$0x3]  ;;  %v822_v9 = vld [vmem:[#allocation4] sm:$0xff]  ;;  %s2371_s2 = sld [smem:[#allocation24_spill]] }
 0x182   : > { %v694_v44 = vperm.slane %v692_v43, 0  ;;  %v695_v45 = vperm.slane %v692_v43, 1 }
 0x183   : > { %956 = vmatpush.bf16.msra.mxu2 %v1408_v33 }
 0x184   : > { %782 = vmatpush.bf16.msra.mxu0 %v1272_v10  ;;  %969 = vmatpush.bf16.msra.mxu3 %v1416_v34 }
 0x185   : > { %795 = vmatpush.bf16.msra.mxu1 %v1276_v11 }
 0x187   : > { %957 = vmatpush.bf16.msra.mxu2 %v1407_v35  ;;  %p1373_p13 = scmp.ne.s32.totalorder %s2371_s2, 1 }
 0x188   : > { %783 = vmatpush.bf16.msra.mxu0 %v1264_v16  ;;  %970 = vmatpush.bf16.msra.mxu3 %v1415_v36 }
 0x189   : > { %796 = vmatpush.bf16.msra.mxu1 %v1268_v17 }
 0x18b   : > { %958 = vmatpush.bf16.msra.mxu2 %v1406_v37 }
 0x18c   : > { %784 = vmatpush.bf16.msra.mxu0 %v1256_v22  ;;  %971 = vmatpush.bf16.msra.mxu3 %v1414_v38 }
 0x18d   : > { %797 = vmatpush.bf16.msra.mxu1 %v1260_v23 }
 0x18f   : > { %959 = vmatpush.bf16.msra.mxu2 %v1405_v39 }
 0x190   : > { %785 = vmatpush.bf16.msra.mxu0 %v1248_v28  ;;  %972 = vmatpush.bf16.msra.mxu3 %v1413_v40 }
 0x191   : > { %798 = vmatpush.bf16.msra.mxu1 %v1252_v29 }
 0x193   : > { %786 = vmatmul.bf16.vlgmr.msra.gmra.mxu0 %v675_v30  ;;  %960 = vmatpush.bf16.msra.mxu2 %v1404_v41 }
 0x194   : > { %799 = vmatmul.bf16.vlgmr.msra.gmra.mxu1 %v675_v30  ;;  %973 = vmatpush.bf16.msra.mxu3 %v1412_v42 }
 0x210   : > { %v787_v46 = vpop.f32.mrf.mxu0 }
 0x211   : > { %v788_v47 = vadd.f32 %v787_v46, %v694_v44  ;;  %v800_v48 = vpop.f32.mrf.mxu1 }
 0x212   : > { %v801_v49 = vadd.f32 %v800_v48, %v695_v45 }
 0x213   : > { %v808_v50 = vmul.f32 0.044715, %v788_v47  ;;  %v806_v54 = vmul.f32 0.7978846, %v788_v47  ;;  %v804_v0 = vmul.f32 0.5, %v788_v47 }
 0x214   : > { %v809_v51 = vmul.f32 0.044715, %v801_v49  ;;  %v807_v57 = vmul.f32 0.7978846, %v801_v49  ;;  %v805_v2 = vmul.f32 0.5, %v801_v49 }
 0x215   : > { %v810_v52 = vmul.f32 %v808_v50, %v788_v47 }
 0x216   : > { %v811_v53 = vmul.f32 %v809_v51, %v801_v49 }
 0x217   : > { %v812_v55 = vadd.f32 1.0, %v810_v52 }
 0x218   : > { %v789_v56 = vpop.f32.mrf.mxu0  ;;  %v813_v58 = vadd.f32 1.0, %v811_v53 }
 0x219   : > { %v802_v59 = vpop.f32.mrf.mxu1  ;;  %v814_v60 = vmul.f32 %v812_v55, %v806_v54 }
 0x21a   : > { %v815_v61 = vmul.f32 %v813_v58, %v807_v57 }
 0x21b   : > { %1582 = vtanh.f32 %v814_v60 }
 0x21c   : > { %1584 = vtanh.f32 %v815_v61 }
 0x221   : > { %v1583_v62 = vpop.eup %1582 }
 0x222   : > { %v1585_v63 = vpop.eup %1584  ;;  %v818_v1 = vadd.f32 1.0, %v1583_v62 }
 0x223   : > { %v819_v3 = vadd.f32 1.0, %v1585_v63 }
 0x224   : > { %v820_v4 = vmul.f32 %v818_v1, %v804_v0 }
 0x225   : > { %v821_v5 = vmul.f32 %v819_v3, %v805_v2 }
 0x226   : > { %v823_v6 = vpack.c.bf16 %v820_v4, %v820_v4 }
 0x227   : > { %v824_v7 = vpack.c.bf16 %v821_v5, %v821_v5 }
 0x228   : > { %961 = vmatmul.bf16.vlgmr.msra.gmra.mxu2 %v823_v6 }
 0x229   : > { %974 = vmatmul.bf16.vlgmr.msra.gmra.mxu3 %v824_v7 }
 0x2ab   : > { %v962_v8 = vpop.f32.mrf.mxu2 }
 0x2ac   : > { %v975_v10 = vpop.f32.mrf.mxu3 }
 0x2ad   : > { %v976_v11 = vadd.f32 %v975_v10, %v962_v8 }
 0x2af   : > { %v979_v12 = vadd.f32 %v976_v11, %v822_v9 }
 0x2b0   : > { %984 = sbr.rel (%p1373_p13) target bundleno = 704 (0x2c0), region = 92 }
 0x2b1   : > { %980 = vst [vmem:[#allocation4] sm:$0xff] %v979_v12 }
 0x2b3   : > { %v964_v13 = vpop.f32.mrf.mxu2 }
 0x2b4   : > { %v977_v14 = vpop.f32.mrf.mxu3 }
 0x2b5   : > { %v1586_v16 = vld [vmem:[#allocation14] ss:$0 sm:$0xff]  ;;  %v991_v17 = vld [vmem:[#allocation2] sm:$0xff] }
 0x2b6   : > { %v993_v19 = vld [vmem:[%s2183_s18] sm:$0xff] }
 0x2b8   : > { %v985_v15 = vld [vmem:[#allocation4] sm:$0xff] }
 0x2b9   : > { %v990_v18 = vadd.f32 %v1586_v16, %v985_v15 }
 0x2bb   : > { %v992_v20 = vadd.f32 %v991_v17, %v990_v18 }
 0x2bd   : > { %v994_v21 = vadd.f32 %v993_v19, %v992_v20 }
 0x2bf   : > { %995 = vst [vmem:[%s531_s1] sm:$0xff] %v994_v21 }
 0x2c0 PF: > { %s2372_s27 = sld [smem:[#allocation25_spill]]  ;;  %s1009_s22 = sshll.u32 %s531_s1, 4  ;;  %s1010_s22 = int_to_ptr.vmem [resolvable:$true] %s1009_s22 }
 0x2c1   : > { %s2374_s12 = sld [smem:[#allocation38_spill]]  ;;  %s2375_s18 = sand.u32 1, %s1865_s14  }
 0x2c2   : > { %s997_s10 = scalar_lea.sflag [#allocation7], %s2375_s18 }
 0x2c6   : > { %s1375_s6 = sshll.u32 %s2372_s27, 3 }
 0x2c7   : > { %s1007_s28 = scalar_lea.hbm %s2374_s12, %s1375_s6  ;;  %s1787_s11 = scalar_lea.hbm %s2374_s12, 16 }
 0x2c8   : > { %s1011_s30 = sshll.u32 %s1007_s28, 4  ;;  %s1012_s30 = int_to_ptr.hbm [resolvable:$true] %s1011_s30 }
 0x2c9   : > { %s1781_s16 = sshra.s32 %s1012_s30, 4  ;;  %s1782_s16 = int_to_ptr.hbm [resolvable:$true] %s1781_s16 }
 0x2ca   : > { %s1783_s20 = scalar_lea.hbm %s1782_s16, 8  ;;  %p1788_p6 = scmp.lt.s32.totalorder %s1782_s16, %s2374_s12 }
 0x2cb   : > { %p1784_p2 = scmp.ne.s32.totalorder %s1782_s16, %s1783_s20  ;;  %p1789_p8 = scmp.lt.s32.totalorder %s1787_s11, %s1783_s20 }
 0x2cd   : > { %p1785_p4 = pnand %p1784_p2, %p2040_p7  ;;  %p1790_p10 = por %p1789_p8, %p1788_p6 }
 0x2cf   : > { %p1786_p5 = pneg %p1785_p4 }
 0x2d1   : > { %p1791_p12 = pnand %p1790_p10, %p1786_p5 }
 0x2d3   : > { %1794 = shalt.err (!%p1791_p12)
}
 0x2d4   : > { %1440 = dma.vmem_to_hbm [thread:$0]  (%p2040_p7), %s1010_s22, 128, %s1012_s30, %s997_s10  }
 0x2d5 PF: > { %s2376_s1 = sld [smem:[#allocation22_spill]]  ;;  %p1475_p0 = scmp.ge.s32.totalorder %s1901_s23, 2 }
 0x2d7   : > { %p1463_p11 = pnand %p1475_p0, %p2045_p9 }
 0x2d9   : > { %p1464_p3 = pneg %p1463_p11 }
 0x2db   : > { %s1023_s2 = sand.u32 1, %s2376_s1  }
 0x2dc   : > { %s1024_s27 = scalar_lea.sflag [#allocation7], %s1023_s2 }
 0x2dd   : > { %1856 = dma.done.wait (%p1464_p3), %s1024_s27, 128  }
 0x2de   : > { %1858 = vsyncadd (%p1464_p3), %s1024_s27, 4294967168  ;;  %s29_s23 = sadd.s32 1, %s1901_s23   ;;  %s2378_s26 = sld [smem:[#allocation23_spill]] }
 0x2df   : > { %p26_p1 = scmp.ge.s32.totalorder %s29_s23, 6   ;;  %s2379_s18 = sld [smem:[#allocation31_spill]] }
 0x2e0   : > { %s2380_s20 = sld [smem:[#allocation26_spill]]  ;;  %s2383_s13 = smov %s1865_s14 }
 0x2e1   : > { %s2381_s6 = sld [smem:[#allocation29_spill]]  ;;  %s2384_s14 = smov %s1869_s15 }
 0x2e2   : > { %s2382_s22 = sld [smem:[#allocation30_spill]]  ;;  %s2385_s15 = smov %s2099_s7 }
 0x2e3   : > { %s2386_s16 = smov %s1877_s17  ;;  %s2388_s19 = smov %s1893_s21 }
 0x2e4   : > { %s2387_s17 = smov %s2378_s26  ;;  %28 = sbr.rel (!%p26_p1) target bundleno = 20 (0x14), region = 150 }
 0x2e7   : > { %s2389_s21 = smov %s2381_s6 }
 0x2e9   :  { %1030 = vsyncpa [#allocation6], 1 }
 0x2ea   :  { %1032 = vsyncpa [#allocation6 + $0x1], 1 }
 0x2eb   :  { %1033 = vsyncpa [#allocation9], 1 }
 0x2ec   :  { %1034 = vsyncpa [#allocation12], 1 }
 0x2ed   :  { %1036 = vsyncpa [#allocation12 + $0x1], 1 }
 0x2ee   :  { %1037 = vsyncpa [#allocation15], 1 }
 0x2ef   :  { %1038 = vsyncpa [#allocation7], 1 }
 0x2f0   :  { %1040 = vsyncpa [#allocation7 + $0x1], 1 }

// kernel: gpt_neox_layer_forward.4
= control target key start
LH: loop header
LB: loop body
LE: loop exit
PB: predicated region body
PF: predicated region fallthrough
CT: control target
= control target key end

     0   :  { %s1381_s12 = smov 0   ;;  %s1383_s13 = smov 0   ;;  %s1664_s0 = inlined_call_operand.vmem [shape: bf16[2,8,128], index: 0, kind: input, shape index: {}]   ;;  %s1665_s1 = inlined_call_operand.vmem [shape: bf16[2,8,128], index: 1, kind: input, shape index: {}]   ;;  %s1666_s2 = inlined_call_operand.vmem [shape: bf16[2,8,128], index: 2, kind: input, shape index: {}]   ;;  %s1667_s3 = inlined_call_operand.vmem [shape: bf16[2,8,128], index: 3, kind: output, shape index: {}]  }
   0x1   :  { %s1385_s14 = smov 0  }
   0x2 LB: > { %s32_s15 = sadd.s32 1, %s1347_s13  ;;  %p1255_p0 = scmp.ge.s32.totalorder %s1351_s14, 1  ;;  %s1351_s14 = sphi %s1385_s14, %s13_s14   ;;  %s1347_s13 = sphi %s1383_s13, %s1669_s13   ;;  %s1343_s12 = sphi %s1381_s12, %s1668_s12  }
   0x3   : > { %p34_p1 = scmp.ge.s32.totalorder %s32_s15, 2  ;;  %p190_p2 = scmp.lt.s32.totalorder %s1351_s14, 3 }
   0x5   : > { %s1671_s15 = smov (%p34_p1, %s32_s15), 0  ;;  %p191_p3 = pnand %p1255_p0, %p190_p2 }
   0x6   : > { %p232_p4 = scmp.lt.s32.totalorder (!%p191_p3), %s1343_s12, 1  ;;  %s1353_s23 = smov (!%p191_p3), 64  }
   0x7   : > { %194 = sbr.rel (%p191_p3) target bundleno = 965 (0x3c5), region = 32  ;;  %s1354_s24 = smov (!%p191_p3), 96  }
   0x8   : > { %s1355_s25 = smov (!%p191_p3), 32  }
   0xc   : > { %s1673_s12 = smov (!%p232_p4, %s1343_s12), 1  ;;  %v1356_v3 = vmov 1983009808   ;;  %v1357_v18 = vmov 1934713408   ;;  %vm296_vm0 = vcmask 1047556  }
   0xd   : > { %s1399_s16 = sshll.u32 %s1673_s12, 2  ;;  %v287_v4 = vunpack.c.l.s4 %v1356_v3  ;;  %v301_v19 = vunpack.c.l.s4 %v1357_v18  ;;  %vm392_vm1 = vcmask 257024   ;;  %vm406_vm2 = vcmask 261120  }
   0xe   : > { %s238_s19 = scalar_lea.vmem %s1664_s0, %s1399_s16  ;;  %s245_s22 = scalar_lea.vmem %s1665_s1, %s1399_s16  ;;  %vm397_vm3 = vcmask 7168   ;;  %vm763_vm5 = vcmask 64512   ;;  %vm888_vm6 = vcmask 1043456   ;;  %vm1138_vm7 = vcmask 523264  }
   0xf   : > { %v265_v0 = vld [vmem:[%s238_s19] sm:$0xf]  ;;  %v1415_v10 = vunpack.c.0.s8 %v287_v4  ;;  %v1420_v32 = vunpack.c.0.s8 %v301_v19  ;;  %s252_s28 = scalar_lea.vmem %s1666_s2, %s1399_s16  ;;  %vm1140_vm8 = vcmask 785408   ;;  %s259_s4 = scalar_lea.vmem %s1667_s3, %s1399_s16 }
  0x10   : > { %269 = vrot.lane.b32.xlu1 %v265_v0, %s1353_s23  ;;  %267 = vrot.lane.b32.xlu0 %v265_v0, %s1354_s24  ;;  %v418_v1 = vld [vmem:[%s245_s22] sm:$0xf]  ;;  %v276_v8 = vshrl.u32 %v265_v0, 16 }
  0x11   : > { %422 = vrot.lane.b32.xlu2 %v418_v1, %s1353_s23  ;;  %v429_v20 = vshrl.u32 %v418_v1, 16 }
  0x18   : > { %271 = vrot.lane.b32.xlu1 %v265_v0, %s1355_s25  ;;  %420 = vrot.lane.b32.xlu0 %v418_v1, %s1354_s24 }
  0x19   : > { %424 = vrot.lane.b32.xlu2 %v418_v1, %s1355_s25 }
  0x6b   : > { %v423_v2 = vpop.permute.xlu2 %422 }
  0x6c   : > { %v435_v13 = vshrl.u32 %v423_v2, 16 }
  0x73   : > { %v425_v5 = vpop.permute.xlu2 %424 }
  0x74   : > { %v434_v12 = vpack.i.b16 %v425_v5, %v423_v2  ;;  %v436_v15 = vshrl.u32 %v425_v5, 16 }
  0x76   : > { %v447_v17 = vperm.slane %v434_v12, %v1415_v10  ;;  %v437_v23 = vpack.i.b16 %v436_v15, %v435_v13 }
  0x78   : > { %v448_v31 = vrot.slane %v447_v17, 4  ;;  %v474_v38 = vperm.slane %v437_v23, %v1415_v10 }
  0x7a   : > { %v475_v54 = vrot.slane %v474_v38, 4 }
  0x82   : > { %v270_v6 = vpop.permute.xlu1 %269  ;;  %v268_v7 = vpop.permute.xlu0 %267 }
  0x83   : > { %v277_v9 = vshrl.u32 %v268_v7, 16  ;;  %v275_v11 = vpack.i.b16 %v268_v7, %v265_v0  ;;  %v282_v21 = vshrl.u32 %v270_v6, 16 }
  0x85   : > { %v278_v14 = vpack.i.b16 %v277_v9, %v276_v8  ;;  %v289_v16 = vperm.slane %v275_v11, %v1415_v10 }
  0x87   : > { %v316_v22 = vperm.slane %v278_v14, %v1415_v10  ;;  %v298_v30 = vrot.slane %v289_v16, 4 }
  0x89   : > { %v324_v37 = vrot.slane %v316_v22, 4 }
  0x8a   : > { %v272_v24 = vpop.permute.xlu1 %271  ;;  %v421_v25 = vpop.permute.xlu0 %420 }
  0x8b   : > { %v281_v26 = vpack.i.b16 %v272_v24, %v270_v6  ;;  %v283_v27 = vshrl.u32 %v272_v24, 16  ;;  %v428_v28 = vpack.i.b16 %v421_v25, %v418_v1  ;;  %v430_v29 = vshrl.u32 %v421_v25, 16 }
  0x8d   : > { %v284_v33 = vpack.i.b16 %v283_v27, %v282_v21  ;;  %v294_v34 = vperm.slane %v281_v26, %v1415_v10  ;;  %v431_v35 = vpack.i.b16 %v430_v29, %v429_v20  ;;  %v442_v36 = vperm.slane %v428_v28, %v1415_v10 }
  0x8f   : > { %v295_v39 = vrot.slane %v294_v34, 4  ;;  %v299_v40 = vsel %vm296_vm0, %v294_v34, %v298_v30  ;;  %v321_v41 = vperm.slane %v284_v33, %v1415_v10  ;;  %v450_v42 = vsel %vm296_vm0, %v448_v31, %v442_v36 }
  0x90   : > { %v307_v43 = vperm.slane %v299_v40, %v1420_v32  ;;  %v451_v44 = vrot.slane %v442_v36, 4  ;;  %v456_v45 = vperm.slane %v450_v42, %v1420_v32  ;;  %v469_v49 = vperm.slane %v431_v35, %v1415_v10 }
  0x91   : > { %v297_v46 = vsel %vm296_vm0, %v295_v39, %v289_v16  ;;  %v322_v47 = vrot.slane %v321_v41, 4  ;;  %v325_v48 = vsel %vm296_vm0, %v321_v41, %v324_v37 }
  0x92   : > { %v303_v50 = vperm.slane %v297_v46, %v1420_v32  ;;  %v310_v51 = vrot.slane %v307_v43, 4  ;;  %v333_v52 = vperm.slane %v325_v48, %v1420_v32  ;;  %v452_v53 = vsel %vm296_vm0, %v447_v17, %v451_v44  ;;  %v1456_v17 = vld [vmem:[%s252_s28] sm:$0xf] }
  0x93   : > { %v323_v55 = vsel %vm296_vm0, %v322_v47, %v316_v22  ;;  %v460_v56 = vperm.slane %v452_v53, %v1420_v32  ;;  %v461_v62 = vrot.slane %v456_v45, 4  ;;  %v476_v3 = vsel %vm296_vm0, %v475_v54, %v469_v49  ;;  %543 = vrot.lane.b32.xlu0 %v1456_v17, %s1354_s24  ;;  %545 = vrot.lane.b32.xlu1 %v1456_v17, %s1353_s23 }
  0x94   : > { %v308_v57 = vrot.slane %v303_v50, 4  ;;  %v311_v58 = vsel %vm296_vm0, 0, %v310_v51  ;;  %v329_v59 = vperm.slane %v323_v55, %v1420_v32  ;;  %v336_v60 = vrot.slane %v333_v52, 4  ;;  %547 = vrot.lane.b32.xlu2 %v1456_v17, %s1355_s25 }
  0x95   : > { %v343_v61 = vrot.slane %v311_v58, 4  ;;  %v463_v63 = vrot.slane %v460_v56, 4  ;;  %v338_v4 = vsel %vm296_vm0, %v310_v51, %v303_v50  ;;  %v477_v12 = vrot.slane %v469_v49, 4 }
  0x96   : > { %v309_v0 = vsel %vm296_vm0, 0, %v308_v57  ;;  %v334_v1 = vrot.slane %v329_v59, 4  ;;  %v337_v2 = vsel %vm296_vm0, 0, %v336_v60  ;;  %v357_v11 = vsel %vm296_vm0, %v336_v60, %v329_v59 }
  0x97   : > { %v344_v5 = vsel %vm296_vm0, %v343_v61, %v309_v0  ;;  %v362_v6 = vrot.slane %v337_v2, 4  ;;  %v464_v7 = vsel %vm296_vm0, 0, %v463_v63  ;;  %v462_v14 = vsel %vm296_vm0, 0, %v461_v62 }
  0x98   : > { %v335_v8 = vsel %vm296_vm0, 0, %v334_v1  ;;  %v348_v9 = vperm.slane %v344_v5, %v1415_v10  ;;  %v482_v15 = vperm.slane %v476_v3, %v1420_v32  ;;  %v496_v16 = vrot.slane %v464_v7, 4 }
  0x99   : > { %v363_v13 = vsel %vm296_vm0, %v362_v6, %v335_v8  ;;  %v342_v18 = vperm.slane %v338_v4, %v1415_v10  ;;  %v478_v21 = vsel %vm296_vm0, %v474_v38, %v477_v12  ;;  %v361_v22 = vperm.slane %v357_v11, %v1415_v10 }
  0x9a   : > { %v349_v19 = vrot.slane %v348_v9, 4  ;;  %v367_v20 = vperm.slane %v363_v13, %v1415_v10  ;;  %v486_v23 = vperm.slane %v478_v21, %v1420_v32  ;;  %v491_v24 = vsel %vm296_vm0, %v463_v63, %v456_v45 }
  0x9b   : > { %v497_v25 = vsel %vm296_vm0, %v496_v16, %v462_v14  ;;  %v487_v28 = vrot.slane %v482_v15, 4  ;;  %v495_v34 = vperm.slane %v491_v24, %v1415_v10 }
  0x9c   : > { %v350_v26 = vsel %vm296_vm0, %v349_v19, %v342_v18  ;;  %v368_v27 = vrot.slane %v367_v20, 4  ;;  %v501_v29 = vperm.slane %v497_v25, %v1415_v10  ;;  %v489_v31 = vrot.slane %v486_v23, 4 }
  0x9d   : > { %v354_v30 = vperm.slane %v350_v26, %v1420_v32  ;;  %v488_v40 = vsel %vm296_vm0, 0, %v487_v28  ;;  %v552_v19 = vshrl.u32 %v1456_v17, 16  ;;  %v744_v28 = vlaneseq }
  0x9e   : > { %v369_v33 = vsel %vm296_vm0, %v368_v27, %v361_v22  ;;  %v502_v35 = vrot.slane %v501_v29, 4  ;;  %v490_v38 = vsel %vm296_vm0, 0, %v489_v31  ;;  %v510_v48 = vsel %vm296_vm0, %v489_v31, %v482_v15 }
  0x9f   : > { %v355_v36 = vrot.slane %v354_v30, 4  ;;  %v373_v37 = vperm.slane %v369_v33, %v1420_v32  ;;  %v380_v39 = vshrl.u32 %v354_v30, 16  ;;  %v515_v41 = vrot.slane %v490_v38, 4 }
  0xa0   : > { %v503_v42 = vsel %vm296_vm0, %v502_v35, %v495_v34  ;;  %v514_v56 = vperm.slane %v510_v48, %v1415_v10  ;;  %v1358_v31 = vmov -inf   ;;  %v745_v38 = vshrl.u32 %v744_v28, 7 }
  0xa1   : > { %v356_v43 = vsel %vm296_vm0, 0, %v355_v36  ;;  %v374_v44 = vrot.slane %v373_v37, 4  ;;  %v378_v45 = vpack.i.b16 %v373_v37, %v354_v30  ;;  %v381_v46 = vshrl.u32 %v373_v37, 16  ;;  %398 = vst.msk [vmem:[#allocation3] sm:$0xff] %vm397_vm3, %v1358_v31 }
  0xa2   : > { %v507_v47 = vperm.slane %v503_v42, %v1420_v32  ;;  %v516_v49 = vsel %vm296_vm0, %v515_v41, %v488_v40  ;;  %v388_v54 = vshrl.u32 %v356_v43, 16  ;;  %399 = vst.msk [vmem:[#allocation3 + $0x8] sm:$0xff] %vm397_vm3, %v1358_v31 }
  0xa3   : > { %v375_v50 = vsel %vm296_vm0, 0, %v374_v44  ;;  %v382_v51 = vpack.i.b16 %v381_v46, %v380_v39  ;;  %393 = vst.msk [vmem:[#allocation2] sm:$0xf] %vm392_vm1, %v378_v45  ;;  %v520_v52 = vperm.slane %v516_v49, %v1415_v10  ;;  %v749_v39 = vand.u32 127, %v744_v28 }
  0xa4   : > { %v386_v53 = vpack.i.b16 %v375_v50, %v356_v43  ;;  %v389_v55 = vshrl.u32 %v375_v50, 16  ;;  %v508_v59 = vrot.slane %v507_v47, 4  ;;  %v532_v62 = vshrl.u32 %v507_v47, 16  ;;  %400 = vst.msk [vmem:[#allocation3 + $0x10] sm:$0xff] %vm397_vm3, %v1358_v31 }
  0xa5   : > { %394 = vst.msk [vmem:[#allocation2 + $0x4] sm:$0xf] %vm392_vm1, %v382_v51  ;;  %v521_v57 = vrot.slane %v520_v52, 4  ;;  %vm752_vm4 = vcmp.le.s32.totalorder %v749_v39, %v745_v38 }
  0xa6   : > { %v390_v58 = vpack.i.b16 %v389_v55, %v388_v54  ;;  %395 = vst.msk [vmem:[#allocation2 + $0x8] sm:$0xf] %vm392_vm1, %v386_v53  ;;  %v509_v1 = vsel %vm296_vm0, 0, %v508_v59 }
  0xa7   : > { %v522_v60 = vsel %vm296_vm0, %v521_v57, %v514_v56  ;;  %v538_v7 = vshrl.u32 %v509_v1, 16  ;;  %401 = vst.msk [vmem:[#allocation3 + $0x18] sm:$0xff] %vm397_vm3, %v1358_v31 }
  0xa8   : > { %396 = vst.msk [vmem:[#allocation2 + $0xc] sm:$0xf] %vm392_vm1, %v390_v58  ;;  %v526_v61 = vperm.slane %v522_v60, %v1420_v32 }
  0xaa   : > { %v531_v63 = vpack.i.b16 %v526_v61, %v507_v47  ;;  %v533_v0 = vshrl.u32 %v526_v61, 16  ;;  %v527_v2 = vrot.slane %v526_v61, 4  ;;  %v663_v14 = vld [vmem:[#allocation2] sm:$0xf] }
  0xac   : > { %v672_v3 = vsel %vm406_vm2, %v531_v63, 0  ;;  %v534_v4 = vpack.i.b16 %v533_v0, %v532_v62  ;;  %v528_v5 = vsel %vm296_vm0, 0, %v527_v2  ;;  %v664_v15 = vld [vmem:[#allocation2 + $0x4] sm:$0xf] }
  0xad   : > { %681 = vmatpush.bf16.xpose.msra.mxu0 %v672_v3  ;;  %v537_v6 = vpack.i.b16 %v528_v5, %v509_v1  ;;  %v539_v8 = vshrl.u32 %v528_v5, 16  ;;  %v665_v16 = vld [vmem:[#allocation2 + $0x8] sm:$0xf] }
  0xae   : > { %v691_v9 = vsel %vm406_vm2, %v534_v4, 0 }
  0xaf   : > { %700 = vmatpush.bf16.xpose.msra.mxu1 %v691_v9  ;;  %v710_v11 = vsel %vm406_vm2, %v537_v6, 0  ;;  %v540_v12 = vpack.i.b16 %v539_v8, %v538_v7  ;;  %v666_v18 = vld [vmem:[#allocation2 + $0xc] sm:$0xf] }
  0xb0   : > { %719 = vmatpush.bf16.xpose.msra.mxu2 %v710_v11 }
  0xb1   : > { %v729_v13 = vsel %vm406_vm2, %v540_v12, 0 }
  0xb2   : > { %738 = vmatpush.bf16.xpose.msra.mxu3 %v729_v13 }
  0xb4   : > { %1260 = vmatmul.msk.bf16.vlgmr.msra.gmra.mxu0 %vm406_vm2, %v663_v14 }
  0xb6   : > { %1261 = vmatmul.msk.bf16.vlgmr.msra.gmra.mxu1 %vm406_vm2, %v664_v15 }
  0xb7   : > { %1262 = vmatmul.msk.bf16.vlgmr.msra.gmra.mxu2 %vm406_vm2, %v665_v16 }
  0xb9   : > { %1263 = vmatmul.msk.bf16.vlgmr.msra.gmra.mxu3 %vm406_vm2, %v666_v18 }
  0xee   : > { %v548_v21 = vpop.permute.xlu2 %547 }
  0xef   : > { %v559_v24 = vshrl.u32 %v548_v21, 16 }
 0x105   : > { %v544_v20 = vpop.permute.xlu0 %543  ;;  %v546_v25 = vpop.permute.xlu1 %545 }
 0x106   : > { %v551_v22 = vpack.i.b16 %v544_v20, %v1456_v17  ;;  %v553_v23 = vshrl.u32 %v544_v20, 16  ;;  %v557_v26 = vpack.i.b16 %v548_v21, %v546_v25  ;;  %v558_v27 = vshrl.u32 %v546_v25, 16 }
 0x108   : > { %v554_v29 = vpack.i.b16 %v553_v23, %v552_v19  ;;  %v565_v30 = vperm.slane %v551_v22, %v1415_v10  ;;  %v560_v33 = vpack.i.b16 %v559_v24, %v558_v27  ;;  %v570_v34 = vperm.slane %v557_v26, %v1415_v10 }
 0x10a   : > { %v573_v35 = vrot.slane %v565_v30, 4  ;;  %v591_v17 = vperm.slane %v554_v29, %v1415_v10  ;;  %v571_v36 = vrot.slane %v570_v34, 4  ;;  %v596_v37 = vperm.slane %v560_v33, %v1415_v10 }
 0x10c   : > { %v599_v40 = vrot.slane %v591_v17, 4  ;;  %v574_v41 = vsel %vm296_vm0, %v570_v34, %v573_v35  ;;  %v572_v42 = vsel %vm296_vm0, %v571_v36, %v565_v30  ;;  %v597_v44 = vrot.slane %v596_v37, 4 }
 0x10d   : > { %v582_v43 = vperm.slane %v574_v41, %v1420_v32  ;;  %v578_v45 = vperm.slane %v572_v42, %v1420_v32 }
 0x10e   : > { %v600_v46 = vsel %vm296_vm0, %v596_v37, %v599_v40  ;;  %v598_v48 = vsel %vm296_vm0, %v597_v44, %v591_v17  ;;  %v1359_v44 = vmov 0  }
 0x10f   : > { %v585_v47 = vrot.slane %v582_v43, 4  ;;  %v608_v49 = vperm.slane %v600_v46, %v1420_v32  ;;  %v583_v50 = vrot.slane %v578_v45, 4  ;;  %v604_v51 = vperm.slane %v598_v48, %v1420_v32  ;;  %1303 = vset.pattern.permute.xlu2 %v1359_v44  ;;  %1302 = vset.pattern.permute.xlu0 %v1359_v44  ;;  %v1571_v46 = vld [vmem:[#allocation3] sm:$0xff] }
 0x110   : > { %1304 = vset.pattern.permute.xlu1 %v1359_v44 }
 0x111   : > { %v586_v52 = vsel %vm296_vm0, 0, %v585_v47  ;;  %v611_v53 = vrot.slane %v608_v49, 4  ;;  %v584_v55 = vsel %vm296_vm0, 0, %v583_v50  ;;  %v609_v56 = vrot.slane %v604_v51, 4  ;;  %v760_v50 = vld [vmem:[#allocation3 + $0x8] sm:$0xff] }
 0x112   : > { %v618_v57 = vrot.slane %v586_v52, 4  ;;  %v613_v58 = vsel %vm296_vm0, %v585_v47, %v578_v45  ;;  %v1360_v45 = vmov 0.0  }
 0x113   : > { %v612_v60 = vsel %vm296_vm0, 0, %v611_v53  ;;  %v632_v61 = vsel %vm296_vm0, %v611_v53, %v604_v51  ;;  %v610_v1 = vsel %vm296_vm0, 0, %v609_v56  ;;  %v617_v3 = vperm.slane %v613_v58, %v1415_v10  ;;  %402 = vst.msk [vmem:[#allocation4] sm:$0xff] %vm397_vm3, %v1360_v45  ;;  %v761_v51 = vld [vmem:[#allocation3 + $0x10] sm:$0xff] }
 0x114   : > { %v637_v0 = vrot.slane %v612_v60, 4  ;;  %v619_v2 = vsel %vm296_vm0, %v618_v57, %v584_v55  ;;  %v636_v7 = vperm.slane %v632_v61, %v1415_v10  ;;  %403 = vst.msk [vmem:[#allocation4 + $0x8] sm:$0xff] %vm397_vm3, %v1360_v45  ;;  %v762_v55 = vld [vmem:[#allocation3 + $0x18] sm:$0xff] }
 0x115   : > { %v623_v4 = vperm.slane %v619_v2, %v1415_v10  ;;  %404 = vst.msk [vmem:[#allocation4 + $0x10] sm:$0xff] %vm397_vm3, %v1360_v45 }
 0x116   : > { %v638_v5 = vsel %vm296_vm0, %v637_v0, %v610_v1  ;;  %405 = vst.msk [vmem:[#allocation4 + $0x18] sm:$0xff] %vm397_vm3, %v1360_v45 }
 0x117   : > { %v624_v6 = vrot.slane %v623_v4, 4  ;;  %v642_v8 = vperm.slane %v638_v5, %v1415_v10  ;;  %407 = vst.msk [vmem:[#allocation5] sm:$0xff] %vm406_vm2, %v1360_v45 }
 0x118   : > { %408 = vst.msk [vmem:[#allocation5 + $0x8] sm:$0xff] %vm406_vm2, %v1360_v45 }
 0x119   : > { %v625_v11 = vsel %vm296_vm0, %v624_v6, %v617_v3  ;;  %v643_v12 = vrot.slane %v642_v8, 4  ;;  %409 = vst.msk [vmem:[#allocation5 + $0x10] sm:$0xff] %vm406_vm2, %v1360_v45 }
 0x11a   : > { %v629_v14 = vperm.slane %v625_v11, %v1420_v32  ;;  %410 = vst.msk [vmem:[#allocation5 + $0x18] sm:$0xff] %vm406_vm2, %v1360_v45 }
 0x11b   : > { %v644_v18 = vsel %vm296_vm0, %v643_v12, %v636_v7 }
 0x11c   : > { %v648_v21 = vperm.slane %v644_v18, %v1420_v32  ;;  %v654_v22 = vshrl.u32 %v629_v14, 16  ;;  %v630_v23 = vrot.slane %v629_v14, 4 }
 0x11e   : > { %v653_v27 = vpack.i.b16 %v648_v21, %v629_v14  ;;  %v655_v28 = vshrl.u32 %v648_v21, 16  ;;  %v631_v29 = vsel %vm296_vm0, 0, %v630_v23  ;;  %v649_v31 = vrot.slane %v648_v21, 4 }
 0x11f   : > { %v660_v35 = vshrl.u32 %v631_v29, 16 }
 0x120   : > { %v890_v33 = vsel %vm888_vm6, %v653_v27, 0  ;;  %v656_v34 = vpack.i.b16 %v655_v28, %v654_v22  ;;  %v650_v17 = vsel %vm296_vm0, 0, %v649_v31 }
 0x121   : > { %899 = vmatpush.bf16.msrb.mxu0 %v890_v33  ;;  %v659_v37 = vpack.i.b16 %v650_v17, %v631_v29  ;;  %v661_v38 = vshrl.u32 %v650_v17, 16  ;;  %v824_v33 = vld [vmem:[#allocation4] sm:$0xff] }
 0x122   : > { %v909_v36 = vsel %vm888_vm6, %v656_v34, 0 }
 0x123   : > { %918 = vmatpush.bf16.msrb.mxu1 %v909_v36  ;;  %v928_v40 = vsel %vm888_vm6, %v659_v37, 0  ;;  %v662_v41 = vpack.i.b16 %v661_v38, %v660_v35 }
 0x124   : > { %937 = vmatpush.bf16.msrb.mxu2 %v928_v40  ;;  %v826_v40 = vld [vmem:[#allocation4 + $0x10] sm:$0xff] }
 0x125   : > { %v947_v43 = vsel %vm888_vm6, %v662_v41, 0  ;;  %v827_v41 = vld [vmem:[#allocation4 + $0x18] sm:$0xff] }
 0x126   : > { %956 = vmatpush.bf16.msrb.mxu3 %v947_v43 }
 0x131   : > { %v683_v54 = vpop.f32.mrf.mxu0 }
 0x132   : > { %v1525_v59 = vsel %vm752_vm4, %v683_v54, -1e+30 }
 0x133   : > { %v702_v62 = vpop.f32.mrf.mxu1  ;;  %v764_v63 = vsel %vm763_vm5, %v1525_v59, -inf }
 0x134   : > { %765 = vmax.xlane.f32.xlu2 %v764_v63  ;;  %v1539_v9 = vsel %vm752_vm4, %v702_v62, -1e+30 }
 0x135   : > { %v767_v16 = vsel %vm763_vm5, %v1539_v9, -inf }
 0x139   : > { %v685_v13 = vpop.f32.mrf.mxu0 }
 0x13a   : > { %v721_v15 = vpop.f32.mrf.mxu2 }
 0x13b   : > { %v1547_v19 = vsel %vm752_vm4, %v721_v15, -1e+30  ;;  %v704_v20 = vpop.f32.mrf.mxu1 }
 0x13c   : > { %768 = vmax.xlane.f32.xlu2 %v767_v16  ;;  %v740_v24 = vpop.f32.mrf.mxu3  ;;  %v770_v25 = vsel %vm763_vm5, %v1547_v19, -inf }
 0x13d   : > { %v1553_v26 = vsel %vm752_vm4, %v740_v24, -1e+30  ;;  %771 = vmax.xlane.f32.xlu0 %v770_v25 }
 0x13e   : > { %v773_v30 = vsel %vm763_vm5, %v1553_v26, -inf }
 0x13f   : > { %774 = vmax.xlane.f32.xlu1 %v773_v30 }
 0x142   : > { %v723_v39 = vpop.f32.mrf.mxu2 }
 0x144   : > { %v742_v42 = vpop.f32.mrf.mxu3 }
 0x1a7   : > { %v766_v47 = vpop.xlane.xlu2 %765 }
 0x1a8   : > { %v1574_v48 = vmax.f32 %v1571_v46, %v766_v47 }
 0x1aa   : > { %v780_v49 = vsub.f32 %v1571_v46, %v1574_v48  ;;  %970 = vst.msk [vmem:[#allocation3] sm:$0xff] %vm397_vm3, %v1574_v48  ;;  %794 = vperm.xlu2 %1303, %v1574_v48   ;;  %v825_v48 = vld [vmem:[#allocation4 + $0x8] sm:$0xff] }
 0x1ac   : > { %v784_v28 = vmul.f32 1.442695, %v780_v49 }
 0x1af   : > { %v769_v52 = vpop.xlane.xlu2 %768 }
 0x1b0   : > { %v777_v53 = vmax.f32 %v760_v50, %v769_v52  ;;  %v772_v54 = vpop.xlane.xlu0 %771 }
 0x1b1   : > { %v778_v56 = vmax.f32 %v761_v51, %v772_v54 }
 0x1b2   : > { %v781_v57 = vsub.f32 %v760_v50, %v777_v53  ;;  %971 = vst.msk [vmem:[#allocation3 + $0x8] sm:$0xff] %vm397_vm3, %v777_v53  ;;  %v775_v58 = vpop.xlane.xlu1 %774 }
 0x1b3   : > { %v782_v60 = vsub.f32 %v761_v51, %v778_v56  ;;  %972 = vst.msk [vmem:[#allocation3 + $0x10] sm:$0xff] %vm397_vm3, %v778_v56  ;;  %v779_v61 = vmax.f32 %v762_v55, %v775_v58  ;;  %804 = vperm.xlu0 %1302, %v778_v56   ;;  %v854_v58 = vld [vmem:[#allocation5 + $0x8] sm:$0xff] }
 0x1b4   : > { %v786_v6 = vmul.f32 1.442695, %v781_v57 }
 0x1b5   : > { %v783_v62 = vsub.f32 %v762_v55, %v779_v61  ;;  %973 = vst.msk [vmem:[#allocation3 + $0x18] sm:$0xff] %vm397_vm3, %v779_v61  ;;  %809 = vperm.xlu1 %1304, %v779_v61   ;;  %v788_v5 = vmul.f32 1.442695, %v782_v60  ;;  %v855_v55 = vld [vmem:[#allocation5 + $0x10] sm:$0xff] }
 0x1b7   : > { %v790_v29 = vmul.f32 1.442695, %v783_v62 }
 0x1bd   : > { %799 = vperm.xlu1 %1304, %v777_v53  }
 0x204   : > { %v795_v63 = vpop.permute.xlu2 %794 }
 0x205   : > { %v812_v0 = vsub.f32 %v1525_v59, %v795_v63 }
 0x207   : > { %v816_v1 = vmul.f32 1.442695, %v812_v0 }
 0x209   : > { %1305 = vpow2.f32 %v816_v1 }
 0x20a   : > { %1307 = vpow2.f32 %v788_v5  ;;  %v853_v5 = vld [vmem:[#allocation5] sm:$0xff] }
 0x20b   : > { %1309 = vpow2.f32 %v786_v6 }
 0x20f   : > { %v1306_v2 = vpop.eup %1305 }
 0x210   : > { %v832_v3 = vsel %vm763_vm5, %v1306_v2, 0.0  ;;  %v881_v4 = vpack.c.bf16 %v1306_v2, %v1306_v2  ;;  %v1308_v12 = vpop.eup %1307 }
 0x211   : > { %833 = vadd.xlane.f32.xlu2 %v832_v3  ;;  %v1310_v15 = vpop.eup %1309  ;;  %v830_v42 = vmul.f32 %v1308_v12, %v826_v40 }
 0x212   : > { %1264 = vmatmul.msk.bf16.vlgmr.msrb.gmra.mxu0 %vm763_vm5, %v881_v4  ;;  %v829_v50 = vmul.f32 %v1310_v15, %v825_v48 }
 0x225   : > { %v805_v7 = vpop.permute.xlu0 %804 }
 0x226   : > { %v814_v8 = vsub.f32 %v1547_v19, %v805_v7 }
 0x227   : > { %v810_v11 = vpop.permute.xlu1 %809 }
 0x228   : > { %v820_v13 = vmul.f32 1.442695, %v814_v8  ;;  %v815_v59 = vsub.f32 %v1553_v26, %v810_v11 }
 0x229   : > { %869 = vperm.xlu2 %1303, %v1308_v12  }
 0x22a   : > { %1311 = vpow2.f32 %v820_v13  ;;  %v822_v14 = vmul.f32 1.442695, %v815_v59  ;;  %v856_v13 = vld [vmem:[#allocation5 + $0x18] sm:$0xff] }
 0x22c   : > { %1313 = vpow2.f32 %v822_v14 }
 0x22f   : > { %v800_v16 = vpop.permute.xlu1 %799 }
 0x230   : > { %v1312_v18 = vpop.eup %1311  ;;  %v813_v20 = vsub.f32 %v1539_v9, %v800_v16 }
 0x231   : > { %864 = vperm.xlu2 %1303, %v1310_v15   ;;  %v838_v21 = vsel %vm763_vm5, %v1312_v18, 0.0  ;;  %v883_v22 = vpack.c.bf16 %v1312_v18, %v1312_v18 }
 0x232   : > { %v1314_v19 = vpop.eup %1313  ;;  %v818_v23 = vmul.f32 1.442695, %v813_v20  ;;  %839 = vadd.xlane.f32.xlu0 %v838_v21 }
 0x233   : > { %1266 = vmatmul.msk.bf16.vlgmr.msrb.gmra.mxu2 %vm763_vm5, %v883_v22  ;;  %v841_v24 = vsel %vm763_vm5, %v1314_v19, 0.0  ;;  %v884_v25 = vpack.c.bf16 %v1314_v19, %v1314_v19 }
 0x234   : > { %1315 = vpow2.f32 %v818_v23  ;;  %842 = vadd.xlane.f32.xlu1 %v841_v24 }
 0x235   : > { %1267 = vmatmul.msk.bf16.vlgmr.msrb.gmra.mxu3 %vm763_vm5, %v884_v25  ;;  %1317 = vpow2.f32 %v784_v28 }
 0x236   : > { %1319 = vpow2.f32 %v790_v29 }
 0x23a   : > { %v1316_v26 = vpop.eup %1315 }
 0x23b   : > { %v835_v27 = vsel %vm763_vm5, %v1316_v26, 0.0  ;;  %v882_v9 = vpack.c.bf16 %v1316_v26, %v1316_v26  ;;  %v1318_v30 = vpop.eup %1317 }
 0x23c   : > { %836 = vadd.xlane.f32.xlu0 %v835_v27  ;;  %v1320_v31 = vpop.eup %1319  ;;  %v828_v34 = vmul.f32 %v1318_v30, %v824_v33 }
 0x23d   : > { %1265 = vmatmul.msk.bf16.vlgmr.msrb.gmra.mxu1 %vm763_vm5, %v882_v9  ;;  %v831_v45 = vmul.f32 %v1320_v31, %v827_v41 }
 0x24d   : > { %859 = vperm.xlu1 %1304, %v1318_v30  }
 0x250   : > { %874 = vperm.xlu0 %1302, %v1320_v31  }
 0x284   : > { %v834_v35 = vpop.xlane.xlu2 %833 }
 0x285   : > { %v844_v17 = vadd.f32 %v834_v35, %v828_v34 }
 0x287   : > { %849 = vst.msk [vmem:[#allocation4] sm:$0xff] %vm397_vm3, %v844_v17 }
 0x28c   : > { %v870_v49 = vpop.permute.xlu2 %869 }
 0x28d   : > { %v879_v56 = vmul.f32 %v870_v49, %v855_v55 }
 0x28e   : > { %v981_v36 = vld [vmem:[#allocation4] sm:$0xff] }
 0x28f   : > { %v901_v37 = vpop.f32.mrf.mxu0  ;;  %1321 = vrcp.f32 %v981_v36 }
 0x294   : > { %v865_v60 = vpop.permute.xlu2 %864 }
 0x295   : > { %v1322_v38 = vpop.eup %1321  ;;  %v878_v1 = vmul.f32 %v865_v60, %v854_v58 }
 0x296   : > { %991 = vperm.xlu1 %1304, %v1322_v38  }
 0x297   : > { %v903_v39 = vpop.f32.mrf.mxu0 }
 0x2a5   : > { %v840_v43 = vpop.xlane.xlu0 %839 }
 0x2a6   : > { %v846_v44 = vadd.f32 %v840_v43, %v830_v42 }
 0x2a7   : > { %v843_v46 = vpop.xlane.xlu1 %842 }
 0x2a8   : > { %851 = vst.msk [vmem:[#allocation4 + $0x10] sm:$0xff] %vm397_vm3, %v846_v44  ;;  %v847_v47 = vadd.f32 %v843_v46, %v831_v45 }
 0x2aa   : > { %852 = vst.msk [vmem:[#allocation4 + $0x18] sm:$0xff] %vm397_vm3, %v847_v47 }
 0x2af   : > { %v837_v51 = vpop.xlane.xlu0 %836  ;;  %v983_v52 = vld [vmem:[#allocation4 + $0x10] sm:$0xff] }
 0x2b0   : > { %v845_v53 = vadd.f32 %v837_v51, %v829_v50  ;;  %1323 = vrcp.f32 %v983_v52 }
 0x2b1   : > { %v984_v54 = vld [vmem:[#allocation4 + $0x18] sm:$0xff] }
 0x2b2   : > { %850 = vst.msk [vmem:[#allocation4 + $0x8] sm:$0xff] %vm397_vm3, %v845_v53  ;;  %1325 = vrcp.f32 %v984_v54 }
 0x2b6   : > { %v1324_v57 = vpop.eup %1323  ;;  %v939_v61 = vpop.f32.mrf.mxu2 }
 0x2b7   : > { %v964_v62 = vadd.f32 %v939_v61, %v879_v56  ;;  %1001 = vperm.xlu0 %1302, %v1324_v57  }
 0x2b8   : > { %v1326_v63 = vpop.eup %1325  ;;  %v958_v0 = vpop.f32.mrf.mxu3 }
 0x2b9   : > { %968 = vst.msk [vmem:[#allocation5 + $0x10] sm:$0xff] %vm406_vm2, %v964_v62  ;;  %1006 = vperm.xlu2 %1303, %v1326_v63   ;;  %v982_v2 = vld [vmem:[#allocation4 + $0x8] sm:$0xff] }
 0x2ba   : > { %v920_v3 = vpop.f32.mrf.mxu1  ;;  %1327 = vrcp.f32 %v982_v2 }
 0x2bb   : > { %v963_v4 = vadd.f32 %v920_v3, %v878_v1 }
 0x2bd   : > { %967 = vst.msk [vmem:[#allocation5 + $0x8] sm:$0xff] %vm406_vm2, %v963_v4 }
 0x2be   : > { %v941_v6 = vpop.f32.mrf.mxu2 }
 0x2bf   : > { %v860_v7 = vpop.permute.xlu1 %859 }
 0x2c0   : > { %v1328_v8 = vpop.eup %1327  ;;  %v877_v11 = vmul.f32 %v860_v7, %v853_v5  ;;  %v960_v12 = vpop.f32.mrf.mxu3  ;;  %v979_v22 = vld [vmem:[#allocation5 + $0x10] sm:$0xff] }
 0x2c1   : > { %996 = vperm.xlu0 %1302, %v1328_v8  }
 0x2c2   : > { %v962_v59 = vadd.f32 %v901_v37, %v877_v11  ;;  %v922_v14 = vpop.f32.mrf.mxu1  ;;  %v875_v15 = vpop.permute.xlu0 %874 }
 0x2c3   : > { %v880_v16 = vmul.f32 %v875_v15, %v856_v13 }
 0x2c4   : > { %966 = vst.msk [vmem:[#allocation5] sm:$0xff] %vm406_vm2, %v962_v59  ;;  %v978_v33 = vld [vmem:[#allocation5 + $0x8] sm:$0xff] }
 0x2c5   : > { %v965_v18 = vadd.f32 %v958_v0, %v880_v16 }
 0x2c7   : > { %969 = vst.msk [vmem:[#allocation5 + $0x18] sm:$0xff] %vm406_vm2, %v965_v18 }
 0x2cb   : > { %v977_v23 = vld [vmem:[#allocation5] sm:$0xff] }
 0x2ce   : > { %v980_v27 = vld [vmem:[#allocation5 + $0x18] sm:$0xff] }
 0x308   : > { %v992_v20 = vpop.permute.xlu1 %991 }
 0x309   : > { %v1009_v24 = vmul.f32 %v992_v20, %v977_v23 }
 0x30b   : > { %v1016_v9 = vrot.slane %v1009_v24, 4 }
 0x313   : > { %v1007_v26 = vpop.permute.xlu2 %1006 }
 0x314   : > { %v1012_v28 = vmul.f32 %v1007_v26, %v980_v27 }
 0x316   : > { %v1026_v35 = vrot.slane %v1012_v28, 4 }
 0x329   : > { %v1002_v21 = vpop.permute.xlu0 %1001 }
 0x32a   : > { %v1011_v19 = vmul.f32 %v1002_v21, %v979_v22 }
 0x32c   : > { %v1013_v25 = vrot.slane %v1011_v19, 4  ;;  %v1017_v30 = vsel %vm296_vm0, %v1011_v19, %v1016_v9 }
 0x32d   : > { %v1025_v36 = vperm.slane %v1017_v30, %v1415_v10 }
 0x32e   : > { %v1015_v29 = vsel %vm296_vm0, %v1013_v25, %v1009_v24 }
 0x32f   : > { %v1021_v31 = vperm.slane %v1015_v29, %v1415_v10  ;;  %v1052_v42 = vrot.slane %v1025_v36, 4 }
 0x331   : > { %v1040_v39 = vrot.slane %v1021_v31, 4 }
 0x333   : > { %v997_v34 = vpop.permute.xlu0 %996 }
 0x334   : > { %v1010_v17 = vmul.f32 %v997_v34, %v978_v33 }
 0x336   : > { %v1027_v37 = vsel %vm296_vm0, %v1026_v35, %v1010_v17  ;;  %v1028_v38 = vrot.slane %v1010_v17, 4 }
 0x337   : > { %v1033_v40 = vperm.slane %v1027_v37, %v1415_v10 }
 0x338   : > { %v1029_v41 = vsel %vm296_vm0, %v1012_v28, %v1028_v38 }
 0x339   : > { %v1037_v43 = vperm.slane %v1029_v41, %v1415_v10  ;;  %v1038_v44 = vrot.slane %v1033_v40, 4  ;;  %v1041_v45 = vsel %vm296_vm0, %v1033_v40, %v1040_v39 }
 0x33a   : > { %v1049_v46 = vperm.slane %v1041_v45, %v1420_v32 }
 0x33b   : > { %v1039_v47 = vsel %vm296_vm0, %v1038_v44, %v1021_v31  ;;  %v1050_v48 = vrot.slane %v1037_v43, 4  ;;  %v1053_v49 = vsel %vm296_vm0, %v1037_v43, %v1052_v42 }
 0x33c   : > { %v1045_v50 = vperm.slane %v1039_v47, %v1420_v32  ;;  %v1061_v51 = vperm.slane %v1053_v49, %v1420_v32  ;;  %v1064_v52 = vrot.slane %v1049_v46, 4 }
 0x33d   : > { %v1051_v53 = vsel %vm296_vm0, %v1050_v48, %v1025_v36 }
 0x33e   : > { %v1057_v54 = vperm.slane %v1051_v53, %v1420_v32  ;;  %v1062_v55 = vrot.slane %v1045_v50, 4  ;;  %v1065_v56 = vsel %vm296_vm0, 0.0, %v1064_v52  ;;  %v1068_v57 = vrot.slane %v1061_v51, 4 }
 0x33f   : > { %v1070_v58 = vsel %vm296_vm0, %v1064_v52, %v1045_v50  ;;  %v1075_v60 = vrot.slane %v1065_v56, 4 }
 0x340   : > { %v1069_v61 = vsel %vm296_vm0, 0.0, %v1068_v57  ;;  %v1063_v62 = vsel %vm296_vm0, 0.0, %v1062_v55  ;;  %v1066_v63 = vrot.slane %v1057_v54, 4  ;;  %v1074_v0 = vperm.slane %v1070_v58, %v1415_v10 }
 0x341   : > { %v1086_v1 = vrot.slane %v1069_v61, 4  ;;  %v1076_v2 = vsel %vm296_vm0, %v1075_v60, %v1063_v62  ;;  %v1081_v3 = vsel %vm296_vm0, %v1068_v57, %v1057_v54 }
 0x342   : > { %v1067_v4 = vsel %vm296_vm0, 0.0, %v1066_v63  ;;  %v1080_v5 = vperm.slane %v1076_v2, %v1415_v10  ;;  %v1085_v6 = vperm.slane %v1081_v3, %v1415_v10  ;;  %v1094_v7 = vrot.slane %v1074_v0, 4 }
 0x343   : > { %v1087_v8 = vsel %vm296_vm0, %v1086_v1, %v1067_v4 }
 0x344   : > { %v1091_v11 = vperm.slane %v1087_v8, %v1415_v10  ;;  %v1095_v12 = vsel %vm296_vm0, %v1080_v5, %v1094_v7  ;;  %v1106_v13 = vrot.slane %v1085_v6, 4  ;;  %v1092_v59 = vrot.slane %v1080_v5, 4 }
 0x345   : > { %v1103_v14 = vperm.slane %v1095_v12, %v1420_v32 }
 0x346   : > { %v1107_v15 = vsel %vm296_vm0, %v1091_v11, %v1106_v13  ;;  %v1093_v16 = vsel %vm296_vm0, %v1092_v59, %v1074_v0  ;;  %v1104_v18 = vrot.slane %v1091_v11, 4 }
 0x347   : > { %v1115_v20 = vperm.slane %v1107_v15, %v1420_v32  ;;  %v1122_v21 = vrot.slane %v1103_v14, 4  ;;  %v1099_v22 = vperm.slane %v1093_v16, %v1420_v32 }
 0x348   : > { %v1105_v19 = vsel %vm296_vm0, %v1104_v18, %v1085_v6 }
 0x349   : > { %v1123_v10 = vsel %vm296_vm0, %v1115_v20, %v1122_v21  ;;  %v1120_v23 = vrot.slane %v1115_v20, 4  ;;  %v1111_v24 = vperm.slane %v1105_v19, %v1420_v32  ;;  %v1118_v25 = vrot.slane %v1099_v22, 4 }
 0x34a   : > { %1133 = vrot.lane.b32.xlu0 %v1123_v10, %s1354_s24 }
 0x34b   : > { %v1121_v26 = vsel %vm296_vm0, %v1120_v23, %v1103_v14  ;;  %v1116_v27 = vrot.slane %v1111_v24, 4  ;;  %v1119_v9 = vsel %vm296_vm0, %v1111_v24, %v1118_v25 }
 0x34c   : > { %1129 = vrot.lane.b32.xlu2 %v1121_v26, %s1353_s23  ;;  %1125 = vrot.lane.b32.xlu1 %v1119_v9, %s1355_s25 }
 0x34d   : > { %v1117_v28 = vsel %vm296_vm0, %v1116_v27, %v1099_v22 }
 0x3a6   : > { %v1130_v30 = vpop.permute.xlu2 %1129 }
 0x3bc   : > { %v1134_v31 = vpop.permute.xlu0 %1133 }
 0x3be   : > { %v1126_v29 = vpop.permute.xlu1 %1125 }
 0x3bf   : > { %v1137_v32 = vsel %vm406_vm2, %v1117_v28, %v1126_v29 }
 0x3c0   : > { %v1139_v33 = vsel %vm1138_vm7, %v1137_v32, %v1130_v30 }
 0x3c1   : > { %v1141_v34 = vsel %vm1140_vm8, %v1139_v33, %v1134_v31 }
 0x3c2   : > { %v1142_v35 = vpack.c.bf16 %v1141_v34, %v1141_v34 }
 0x3c4   : > { %1143 = vst [vmem:[%s259_s4] sm:$0xf] %v1142_v35 }
 0x3c5 PF: > { %s13_s14 = sadd.s32 1, %s1351_s14   ;;  %s1668_s12 = smov %s1347_s13 }
 0x3c6   : > { %p10_p5 = scmp.ge.s32.totalorder %s13_s14, 4   ;;  %s1669_s13 = smov %s1671_s15 }
 0x3c8   :  { %12 = sbr.rel (!%p10_p5) target bundleno = 2 (0x2), region = 80 }

</bundles_post_ra>
